<compile_context>
chip_gen: v6e
topology: v6e:2x2x1
jax: 0.10.0
libtpu: 0.0.40
codegen_flags: <defaults>
</compile_context>

<pallas_src>
import jax
import jax.numpy as jnp
from jax import lax
from jax.experimental import pallas as pl
from jax.experimental.pallas import tpu as pltpu


# ----------------------------- fused kernel ---------------------------------


def _make_fused_rgcn_kernel(n, num_rel, n_bases, n_layers):
    def kernel(x_ref, a_ref, w_in_ref, b_in_ref, basis_ref, comp_ref,
               root_ref, bias_ref, w_out_ref, b_out_ref, o_ref):
        def mm(a, b):
            # bf16 operands, f32 accumulation (MXU-native on v6e/v7x).
            return jnp.dot(a.astype(jnp.bfloat16), b.astype(jnp.bfloat16),
                           preferred_element_type=jnp.float32)

        def relu_l2norm(h):
            h = jnp.maximum(h, 0.0)
            ssq = jnp.sum(h * h, axis=-1, keepdims=True)
            # == h / max(||h||, 1e-12)  (torch F.normalize semantics)
            return h * lax.rsqrt(jnp.maximum(ssq, 1e-24))

        # input layer (F.dropout is the identity in eval mode)
        h = mm(x_ref[...], w_in_ref[...]) + b_in_ref[...]
        h = relu_l2norm(h)

        for l in range(n_layers):                 # statically unrolled
            # all-relation mean aggregation as ONE stacked matmul:
            #   (R*N, N) @ (N, H) -> (R*N, H)
            agg = mm(a_ref[...], h)
            out = mm(h, root_ref[l]) + bias_ref[l]
            for r in range(num_rel):              # statically unrolled
                # basis decomposition W_r = sum_b comp[l,r,b] * basis[l,b]
                # (scalars from SMEM, combination on the VPU, no reshapes)
                base = (l * num_rel + r) * n_bases
                w_r = comp_ref[base] * basis_ref[l, 0]
                for b in range(1, n_bases):
                    w_r = w_r + comp_ref[base + b] * basis_ref[l, b]
                out = out + mm(agg[r * n:(r + 1) * n, :], w_r)
            h = relu_l2norm(out)

        # output layer (logits last dim is only NUM_CLASS wide -> masked vst;
        # negligible at this size, pad to 128 lanes if classes grow)
        o_ref[...] = mm(h, w_out_ref[...]) + b_out_ref[...]

    return kernel


def rgcn_fused_call(x, a_stacked, w_in, b_in, basis, comp_flat, root, bias,
                    w_out, b_out):
    n = x.shape[0]
    num_class = w_out.shape[1]
    num_rel = a_stacked.shape[0] // n
    n_layers, n_bases = basis.shape[0], basis.shape[1]

    vmem = pl.BlockSpec(memory_space=pltpu.MemorySpace.VMEM)
    smem = pl.BlockSpec(memory_space=pltpu.MemorySpace.SMEM)

    return pl.pallas_call(
        _make_fused_rgcn_kernel(n, num_rel, n_bases, n_layers),
        out_shape=jax.ShapeDtypeStruct((n, num_class), jnp.float32),
        in_specs=[vmem, vmem, vmem, vmem, vmem, smem, vmem, vmem, vmem, vmem],
        out_specs=vmem,
    )(x, a_stacked, w_in, b_in, basis, comp_flat, root, bias, w_out, b_out)


# ----------------------------- model forward --------------------------------


def rgcn_forward(x, a_norm, y, org_ids, params, default_label=-1):
    r, n, _ = a_norm.shape
    # Host-side layout plumbing (free): stack relations along rows so the
    # kernel does one (R*N, N) @ (N, H) aggregation matmul per layer, and
    # flatten comp so the kernel reads it as SMEM scalars.
    a_stacked = a_norm.reshape(r * n, n)
    basis = jnp.stack([lyr["basis"] for lyr in params["convs"]])            # (L,B,H,H)
    comp = jnp.stack([lyr["comp"] for lyr in params["convs"]]).reshape(-1)  # (L*R*B,)
    root = jnp.stack([lyr["root"] for lyr in params["convs"]])              # (L,H,H)
    bias = jnp.stack([lyr["bias"] for lyr in params["convs"]])              # (L,1,H)

    logits = rgcn_fused_call(x, a_stacked, params["w_in"], params["b_in"],
                             basis, comp, root, bias,
                             params["w_out"], params["b_out"])

    # TODO(synk): boolean-mask row selection yields dynamic shapes; done in host JAX.
    mask = y != default_label
    return logits[mask], y[mask], org_ids[mask]


def ref_forward(x, a_norm, y, org_ids, params, default_label=-1):
    def norml2(h):
        return h / jnp.maximum(jnp.linalg.norm(h, axis=-1, keepdims=True), 1e-12)

    h = norml2(jax.nn.relu(x @ params["w_in"] + params["b_in"]))
    for lyr in params["convs"]:
        w = jnp.einsum("rb,bio->rio", lyr["comp"], lyr["basis"])
        agg = jnp.einsum("rij,jh->rih", a_norm, h)
        out = jnp.einsum("rih,rho->io", agg, w) + h @ lyr["root"] + lyr["bias"]
        h = norml2(jax.nn.relu(out))
    logits = h @ params["w_out"] + params["b_out"]
    mask = y != default_label
    return logits[mask], y[mask], org_ids[mask]


# --------------------------------- main --------------------------------------

if __name__ == "__main__":
    N = 32                # nodes
    IN_CH = 32            # in_channels
    HID = 32              # hidden_channels
    NUM_CLASS = 4
    NUM_REL = 3
    N_BASES = 8
    N_LAYERS = 2
    N_EDGES = 96
    DEFAULT_LABEL = -1

    key = jax.random.PRNGKey(0)
    keys = jax.random.split(key, 8)

    # inputs (data.x, edge_index, edge_type, y, org_ids)
    x = jax.random.normal(keys[0], (N, IN_CH), jnp.float32)
    src = jax.random.randint(keys[1], (N_EDGES,), 0, N)
    dst = jax.random.randint(keys[2], (N_EDGES,), 0, N)
    edge_type = jax.random.randint(keys[3], (N_EDGES,), 0, NUM_REL)
    y = jax.random.randint(keys[4], (N,), -1, NUM_CLASS)  # -1 == default_label
    org_ids = jnp.arange(N, dtype=jnp.int32)

    # TODO(synk): edge-list scatter-mean has no static-shape Pallas equivalent;
    # the dense per-relation row-normalized adjacency is built once on the host.
    A = jnp.zeros((NUM_REL, N, N), jnp.float32).at[edge_type, dst, src].add(1.0)
    deg = A.sum(axis=2, keepdims=True)
    A = jnp.where(deg > 0, A / jnp.maximum(deg, 1.0), 0.0)

    # deterministic synthetic parameters (shapes as in the PyTorch module)
    def nrm(k, shape, scale):
        return scale * jax.random.normal(k, shape, jnp.float32)

    pkeys = jax.random.split(keys[5], 4 + 4 * N_LAYERS)
    params = {
        "w_in": nrm(pkeys[0], (IN_CH, HID), 1.0 / jnp.sqrt(IN_CH)),
        "b_in": nrm(pkeys[1], (1, HID), 0.1),
        "w_out": nrm(pkeys[2], (HID, NUM_CLASS), 1.0 / jnp.sqrt(HID)),
        "b_out": nrm(pkeys[3], (1, NUM_CLASS), 0.1),
        "convs": [],
    }
    for l in range(N_LAYERS):
        base = 4 + 4 * l
        params["convs"].append(
            {
                "basis": nrm(pkeys[base + 0], (N_BASES, HID, HID), 1.0 / jnp.sqrt(HID)),
                "comp": nrm(pkeys[base + 1], (NUM_REL, N_BASES), 1.0 / jnp.sqrt(N_BASES)),
                "root": nrm(pkeys[base + 2], (HID, HID), 1.0 / jnp.sqrt(HID)),
                "bias": nrm(pkeys[base + 3], (1, HID), 0.1),
            }
        )

    out, Y, ids = rgcn_forward(x, A, y, org_ids, params, DEFAULT_LABEL)
    out = jax.block_until_ready(out)
    Y = jax.block_until_ready(Y)

    # sanity check against pure-JAX f32 reference
    ref_out, ref_Y, ref_ids = ref_forward(x, A, y, org_ids, params, DEFAULT_LABEL)
    assert out.shape == ref_out.shape and Y.shape == ref_Y.shape
    assert jnp.allclose(out, ref_out, rtol=2e-2, atol=2e-2), float(
        jnp.max(jnp.abs(out - ref_out)))
    assert jnp.array_equal(Y, ref_Y)
    assert jnp.array_equal(ids, ref_ids)

    print("KERNEL_OK")
</pallas_src>

<mosaic_0001>
module attributes {stable_mosaic.version = 11 : i64} {
  func.func @kernel(%arg0: memref<32x32xf32, #tpu.memory_space<vmem>>, %arg1: memref<96x32xf32, #tpu.memory_space<vmem>>, %arg2: memref<32x32xf32, #tpu.memory_space<vmem>>, %arg3: memref<1x32xf32, #tpu.memory_space<vmem>>, %arg4: memref<2x8x32x32xf32, #tpu.memory_space<vmem>>, %arg5: memref<48xf32, #tpu.memory_space<smem>>, %arg6: memref<2x32x32xf32, #tpu.memory_space<vmem>>, %arg7: memref<2x1x32xf32, #tpu.memory_space<vmem>>, %arg8: memref<32x4xf32, #tpu.memory_space<vmem>>, %arg9: memref<1x4xf32, #tpu.memory_space<vmem>>, %arg10: memref<32x4xf32, #tpu.memory_space<vmem>>) attributes {dimension_semantics = [], scalar_prefetch = 0 : i64, scratch_operands = 0 : i64, tpu.core_type = #tpu.core_type<tc>} {
    %c0 = arith.constant 0 : index
    %c0_0 = arith.constant 0 : index
    %0 = vector.load %arg0[%c0, %c0_0] : memref<32x32xf32, #tpu.memory_space<vmem>>, vector<32x32xf32>
    %c0_1 = arith.constant 0 : index
    %c0_2 = arith.constant 0 : index
    %1 = vector.load %arg2[%c0_1, %c0_2] : memref<32x32xf32, #tpu.memory_space<vmem>>, vector<32x32xf32>
    %2 = arith.truncf %0 : vector<32x32xf32> to vector<32x32xbf16>
    %3 = arith.truncf %1 : vector<32x32xf32> to vector<32x32xbf16>
    %cst = arith.constant dense<0.000000e+00> : vector<32x32xf32>
    %4 = tpu.matmul %2, %3, %cst {dimension_numbers = #tpu.dot_dimension_numbers<[1], [0], [0], [1], [0, 0, 1, 1], [], []>} : vector<32x32xbf16>, vector<32x32xbf16>, vector<32x32xf32> -> vector<32x32xf32>
    %c0_3 = arith.constant 0 : index
    %c0_4 = arith.constant 0 : index
    %5 = vector.load %arg3[%c0_3, %c0_4] : memref<1x32xf32, #tpu.memory_space<vmem>>, vector<1x32xf32>
    %6 = vector.broadcast %5 : vector<1x32xf32> to vector<32x32xf32>
    %7 = arith.addf %4, %6 : vector<32x32xf32>
    %cst_5 = arith.constant 0.000000e+00 : f32
    %8 = vector.broadcast %cst_5 : f32 to vector<32x32xf32>
    %9 = arith.maximumf %7, %8 : vector<32x32xf32>
    %10 = arith.mulf %9, %9 : vector<32x32xf32>
    %cst_6 = arith.constant dense<0.000000e+00> : vector<32xf32>
    %11 = vector.multi_reduction <add>, %10, %cst_6 [1] : vector<32x32xf32> to vector<32xf32>
    %12 = vector.shape_cast %11 : vector<32xf32> to vector<32x1xf32>
    %cst_7 = arith.constant 1.000000e-24 : f32
    %13 = vector.broadcast %cst_7 : f32 to vector<32x1xf32>
    %14 = arith.maximumf %12, %13 : vector<32x1xf32>
    %15 = math.rsqrt %14 : vector<32x1xf32>
    %16 = vector.broadcast %15 : vector<32x1xf32> to vector<32x32xf32>
    %17 = arith.mulf %9, %16 : vector<32x32xf32>
    %c0_8 = arith.constant 0 : index
    %c0_9 = arith.constant 0 : index
    %18 = vector.load %arg1[%c0_8, %c0_9] : memref<96x32xf32, #tpu.memory_space<vmem>>, vector<96x32xf32>
    %19 = arith.truncf %18 : vector<96x32xf32> to vector<96x32xbf16>
    %20 = arith.truncf %17 : vector<32x32xf32> to vector<32x32xbf16>
    %cst_10 = arith.constant dense<0.000000e+00> : vector<96x32xf32>
    %21 = tpu.matmul %19, %20, %cst_10 {dimension_numbers = #tpu.dot_dimension_numbers<[1], [0], [0], [1], [0, 0, 1, 1], [], []>} : vector<96x32xbf16>, vector<32x32xbf16>, vector<96x32xf32> -> vector<96x32xf32>
    %c0_11 = arith.constant 0 : index
    %c0_12 = arith.constant 0 : index
    %c0_13 = arith.constant 0 : index
    %22 = vector.load %arg6[%c0_11, %c0_12, %c0_13] : memref<2x32x32xf32, #tpu.memory_space<vmem>>, vector<1x32x32xf32>
    %23 = vector.shape_cast %22 : vector<1x32x32xf32> to vector<32x32xf32>
    %24 = arith.truncf %17 : vector<32x32xf32> to vector<32x32xbf16>
    %25 = arith.truncf %23 : vector<32x32xf32> to vector<32x32xbf16>
    %cst_14 = arith.constant dense<0.000000e+00> : vector<32x32xf32>
    %26 = tpu.matmul %24, %25, %cst_14 {dimension_numbers = #tpu.dot_dimension_numbers<[1], [0], [0], [1], [0, 0, 1, 1], [], []>} : vector<32x32xbf16>, vector<32x32xbf16>, vector<32x32xf32> -> vector<32x32xf32>
    %c0_15 = arith.constant 0 : index
    %c0_16 = arith.constant 0 : index
    %c0_17 = arith.constant 0 : index
    %27 = vector.load %arg7[%c0_15, %c0_16, %c0_17] : memref<2x1x32xf32, #tpu.memory_space<vmem>>, vector<1x1x32xf32>
    %28 = vector.shape_cast %27 : vector<1x1x32xf32> to vector<1x32xf32>
    %29 = vector.broadcast %28 : vector<1x32xf32> to vector<32x32xf32>
    %30 = arith.addf %26, %29 : vector<32x32xf32>
    %c0_18 = arith.constant 0 : index
    %31 = memref.load %arg5[%c0_18] : memref<48xf32, #tpu.memory_space<smem>>
    %c0_19 = arith.constant 0 : index
    %c0_20 = arith.constant 0 : index
    %c0_21 = arith.constant 0 : index
    %c0_22 = arith.constant 0 : index
    %32 = vector.load %arg4[%c0_19, %c0_20, %c0_21, %c0_22] : memref<2x8x32x32xf32, #tpu.memory_space<vmem>>, vector<1x1x32x32xf32>
    %33 = vector.shape_cast %32 : vector<1x1x32x32xf32> to vector<32x32xf32>
    %34 = vector.broadcast %31 : f32 to vector<32x32xf32>
    %35 = arith.mulf %34, %33 : vector<32x32xf32>
    %c1 = arith.constant 1 : index
    %36 = memref.load %arg5[%c1] : memref<48xf32, #tpu.memory_space<smem>>
    %c0_23 = arith.constant 0 : index
    %c1_24 = arith.constant 1 : index
    %c0_25 = arith.constant 0 : index
    %c0_26 = arith.constant 0 : index
    %37 = vector.load %arg4[%c0_23, %c1_24, %c0_25, %c0_26] : memref<2x8x32x32xf32, #tpu.memory_space<vmem>>, vector<1x1x32x32xf32>
    %38 = vector.shape_cast %37 : vector<1x1x32x32xf32> to vector<32x32xf32>
    %39 = vector.broadcast %36 : f32 to vector<32x32xf32>
    %40 = arith.mulf %39, %38 : vector<32x32xf32>
    %41 = arith.addf %35, %40 : vector<32x32xf32>
    %c2 = arith.constant 2 : index
    %42 = memref.load %arg5[%c2] : memref<48xf32, #tpu.memory_space<smem>>
    %c0_27 = arith.constant 0 : index
    %c2_28 = arith.constant 2 : index
    %c0_29 = arith.constant 0 : index
    %c0_30 = arith.constant 0 : index
    %43 = vector.load %arg4[%c0_27, %c2_28, %c0_29, %c0_30] : memref<2x8x32x32xf32, #tpu.memory_space<vmem>>, vector<1x1x32x32xf32>
    %44 = vector.shape_cast %43 : vector<1x1x32x32xf32> to vector<32x32xf32>
    %45 = vector.broadcast %42 : f32 to vector<32x32xf32>
    %46 = arith.mulf %45, %44 : vector<32x32xf32>
    %47 = arith.addf %41, %46 : vector<32x32xf32>
    %c3 = arith.constant 3 : index
    %48 = memref.load %arg5[%c3] : memref<48xf32, #tpu.memory_space<smem>>
    %c0_31 = arith.constant 0 : index
    %c3_32 = arith.constant 3 : index
    %c0_33 = arith.constant 0 : index
    %c0_34 = arith.constant 0 : index
    %49 = vector.load %arg4[%c0_31, %c3_32, %c0_33, %c0_34] : memref<2x8x32x32xf32, #tpu.memory_space<vmem>>, vector<1x1x32x32xf32>
    %50 = vector.shape_cast %49 : vector<1x1x32x32xf32> to vector<32x32xf32>
    %51 = vector.broadcast %48 : f32 to vector<32x32xf32>
    %52 = arith.mulf %51, %50 : vector<32x32xf32>
    %53 = arith.addf %47, %52 : vector<32x32xf32>
    %c4 = arith.constant 4 : index
    %54 = memref.load %arg5[%c4] : memref<48xf32, #tpu.memory_space<smem>>
    %c0_35 = arith.constant 0 : index
    %c4_36 = arith.constant 4 : index
    %c0_37 = arith.constant 0 : index
    %c0_38 = arith.constant 0 : index
    %55 = vector.load %arg4[%c0_35, %c4_36, %c0_37, %c0_38] : memref<2x8x32x32xf32, #tpu.memory_space<vmem>>, vector<1x1x32x32xf32>
    %56 = vector.shape_cast %55 : vector<1x1x32x32xf32> to vector<32x32xf32>
    %57 = vector.broadcast %54 : f32 to vector<32x32xf32>
    %58 = arith.mulf %57, %56 : vector<32x32xf32>
    %59 = arith.addf %53, %58 : vector<32x32xf32>
    %c5 = arith.constant 5 : index
    %60 = memref.load %arg5[%c5] : memref<48xf32, #tpu.memory_space<smem>>
    %c0_39 = arith.constant 0 : index
    %c5_40 = arith.constant 5 : index
    %c0_41 = arith.constant 0 : index
    %c0_42 = arith.constant 0 : index
    %61 = vector.load %arg4[%c0_39, %c5_40, %c0_41, %c0_42] : memref<2x8x32x32xf32, #tpu.memory_space<vmem>>, vector<1x1x32x32xf32>
    %62 = vector.shape_cast %61 : vector<1x1x32x32xf32> to vector<32x32xf32>
    %63 = vector.broadcast %60 : f32 to vector<32x32xf32>
    %64 = arith.mulf %63, %62 : vector<32x32xf32>
    %65 = arith.addf %59, %64 : vector<32x32xf32>
    %c6 = arith.constant 6 : index
    %66 = memref.load %arg5[%c6] : memref<48xf32, #tpu.memory_space<smem>>
    %c0_43 = arith.constant 0 : index
    %c6_44 = arith.constant 6 : index
    %c0_45 = arith.constant 0 : index
    %c0_46 = arith.constant 0 : index
    %67 = vector.load %arg4[%c0_43, %c6_44, %c0_45, %c0_46] : memref<2x8x32x32xf32, #tpu.memory_space<vmem>>, vector<1x1x32x32xf32>
    %68 = vector.shape_cast %67 : vector<1x1x32x32xf32> to vector<32x32xf32>
    %69 = vector.broadcast %66 : f32 to vector<32x32xf32>
    %70 = arith.mulf %69, %68 : vector<32x32xf32>
    %71 = arith.addf %65, %70 : vector<32x32xf32>
    %c7 = arith.constant 7 : index
    %72 = memref.load %arg5[%c7] : memref<48xf32, #tpu.memory_space<smem>>
    %c0_47 = arith.constant 0 : index
    %c7_48 = arith.constant 7 : index
    %c0_49 = arith.constant 0 : index
    %c0_50 = arith.constant 0 : index
    %73 = vector.load %arg4[%c0_47, %c7_48, %c0_49, %c0_50] : memref<2x8x32x32xf32, #tpu.memory_space<vmem>>, vector<1x1x32x32xf32>
    %74 = vector.shape_cast %73 : vector<1x1x32x32xf32> to vector<32x32xf32>
    %75 = vector.broadcast %72 : f32 to vector<32x32xf32>
    %76 = arith.mulf %75, %74 : vector<32x32xf32>
    %77 = arith.addf %71, %76 : vector<32x32xf32>
    %78 = vector.extract_strided_slice %21 {offsets = [0, 0], sizes = [32, 32], strides = [1, 1]} : vector<96x32xf32> to vector<32x32xf32>
    %79 = arith.truncf %78 : vector<32x32xf32> to vector<32x32xbf16>
    %80 = arith.truncf %77 : vector<32x32xf32> to vector<32x32xbf16>
    %cst_51 = arith.constant dense<0.000000e+00> : vector<32x32xf32>
    %81 = tpu.matmul %79, %80, %cst_51 {dimension_numbers = #tpu.dot_dimension_numbers<[1], [0], [0], [1], [0, 0, 1, 1], [], []>} : vector<32x32xbf16>, vector<32x32xbf16>, vector<32x32xf32> -> vector<32x32xf32>
    %82 = arith.addf %30, %81 : vector<32x32xf32>
    %c8 = arith.constant 8 : index
    %83 = memref.load %arg5[%c8] : memref<48xf32, #tpu.memory_space<smem>>
    %c0_52 = arith.constant 0 : index
    %c0_53 = arith.constant 0 : index
    %c0_54 = arith.constant 0 : index
    %c0_55 = arith.constant 0 : index
    %84 = vector.load %arg4[%c0_52, %c0_53, %c0_54, %c0_55] : memref<2x8x32x32xf32, #tpu.memory_space<vmem>>, vector<1x1x32x32xf32>
    %85 = vector.shape_cast %84 : vector<1x1x32x32xf32> to vector<32x32xf32>
    %86 = vector.broadcast %83 : f32 to vector<32x32xf32>
    %87 = arith.mulf %86, %85 : vector<32x32xf32>
    %c9 = arith.constant 9 : index
    %88 = memref.load %arg5[%c9] : memref<48xf32, #tpu.memory_space<smem>>
    %c0_56 = arith.constant 0 : index
    %c1_57 = arith.constant 1 : index
    %c0_58 = arith.constant 0 : index
    %c0_59 = arith.constant 0 : index
    %89 = vector.load %arg4[%c0_56, %c1_57, %c0_58, %c0_59] : memref<2x8x32x32xf32, #tpu.memory_space<vmem>>, vector<1x1x32x32xf32>
    %90 = vector.shape_cast %89 : vector<1x1x32x32xf32> to vector<32x32xf32>
    %91 = vector.broadcast %88 : f32 to vector<32x32xf32>
    %92 = arith.mulf %91, %90 : vector<32x32xf32>
    %93 = arith.addf %87, %92 : vector<32x32xf32>
    %c10 = arith.constant 10 : index
    %94 = memref.load %arg5[%c10] : memref<48xf32, #tpu.memory_space<smem>>
    %c0_60 = arith.constant 0 : index
    %c2_61 = arith.constant 2 : index
    %c0_62 = arith.constant 0 : index
    %c0_63 = arith.constant 0 : index
    %95 = vector.load %arg4[%c0_60, %c2_61, %c0_62, %c0_63] : memref<2x8x32x32xf32, #tpu.memory_space<vmem>>, vector<1x1x32x32xf32>
    %96 = vector.shape_cast %95 : vector<1x1x32x32xf32> to vector<32x32xf32>
    %97 = vector.broadcast %94 : f32 to vector<32x32xf32>
    %98 = arith.mulf %97, %96 : vector<32x32xf32>
    %99 = arith.addf %93, %98 : vector<32x32xf32>
    %c11 = arith.constant 11 : index
    %100 = memref.load %arg5[%c11] : memref<48xf32, #tpu.memory_space<smem>>
    %c0_64 = arith.constant 0 : index
    %c3_65 = arith.constant 3 : index
    %c0_66 = arith.constant 0 : index
    %c0_67 = arith.constant 0 : index
    %101 = vector.load %arg4[%c0_64, %c3_65, %c0_66, %c0_67] : memref<2x8x32x32xf32, #tpu.memory_space<vmem>>, vector<1x1x32x32xf32>
    %102 = vector.shape_cast %101 : vector<1x1x32x32xf32> to vector<32x32xf32>
    %103 = vector.broadcast %100 : f32 to vector<32x32xf32>
    %104 = arith.mulf %103, %102 : vector<32x32xf32>
    %105 = arith.addf %99, %104 : vector<32x32xf32>
    %c12 = arith.constant 12 : index
    %106 = memref.load %arg5[%c12] : memref<48xf32, #tpu.memory_space<smem>>
    %c0_68 = arith.constant 0 : index
    %c4_69 = arith.constant 4 : index
    %c0_70 = arith.constant 0 : index
    %c0_71 = arith.constant 0 : index
    %107 = vector.load %arg4[%c0_68, %c4_69, %c0_70, %c0_71] : memref<2x8x32x32xf32, #tpu.memory_space<vmem>>, vector<1x1x32x32xf32>
    %108 = vector.shape_cast %107 : vector<1x1x32x32xf32> to vector<32x32xf32>
    %109 = vector.broadcast %106 : f32 to vector<32x32xf32>
    %110 = arith.mulf %109, %108 : vector<32x32xf32>
    %111 = arith.addf %105, %110 : vector<32x32xf32>
    %c13 = arith.constant 13 : index
    %112 = memref.load %arg5[%c13] : memref<48xf32, #tpu.memory_space<smem>>
    %c0_72 = arith.constant 0 : index
    %c5_73 = arith.constant 5 : index
    %c0_74 = arith.constant 0 : index
    %c0_75 = arith.constant 0 : index
    %113 = vector.load %arg4[%c0_72, %c5_73, %c0_74, %c0_75] : memref<2x8x32x32xf32, #tpu.memory_space<vmem>>, vector<1x1x32x32xf32>
    %114 = vector.shape_cast %113 : vector<1x1x32x32xf32> to vector<32x32xf32>
    %115 = vector.broadcast %112 : f32 to vector<32x32xf32>
    %116 = arith.mulf %115, %114 : vector<32x32xf32>
    %117 = arith.addf %111, %116 : vector<32x32xf32>
    %c14 = arith.constant 14 : index
    %118 = memref.load %arg5[%c14] : memref<48xf32, #tpu.memory_space<smem>>
    %c0_76 = arith.constant 0 : index
    %c6_77 = arith.constant 6 : index
    %c0_78 = arith.constant 0 : index
    %c0_79 = arith.constant 0 : index
    %119 = vector.load %arg4[%c0_76, %c6_77, %c0_78, %c0_79] : memref<2x8x32x32xf32, #tpu.memory_space<vmem>>, vector<1x1x32x32xf32>
    %120 = vector.shape_cast %119 : vector<1x1x32x32xf32> to vector<32x32xf32>
    %121 = vector.broadcast %118 : f32 to vector<32x32xf32>
    %122 = arith.mulf %121, %120 : vector<32x32xf32>
    %123 = arith.addf %117, %122 : vector<32x32xf32>
    %c15 = arith.constant 15 : index
    %124 = memref.load %arg5[%c15] : memref<48xf32, #tpu.memory_space<smem>>
    %c0_80 = arith.constant 0 : index
    %c7_81 = arith.constant 7 : index
    %c0_82 = arith.constant 0 : index
    %c0_83 = arith.constant 0 : index
    %125 = vector.load %arg4[%c0_80, %c7_81, %c0_82, %c0_83] : memref<2x8x32x32xf32, #tpu.memory_space<vmem>>, vector<1x1x32x32xf32>
    %126 = vector.shape_cast %125 : vector<1x1x32x32xf32> to vector<32x32xf32>
    %127 = vector.broadcast %124 : f32 to vector<32x32xf32>
    %128 = arith.mulf %127, %126 : vector<32x32xf32>
    %129 = arith.addf %123, %128 : vector<32x32xf32>
    %130 = vector.extract_strided_slice %21 {offsets = [32, 0], sizes = [32, 32], strides = [1, 1]} : vector<96x32xf32> to vector<32x32xf32>
    %131 = arith.truncf %130 : vector<32x32xf32> to vector<32x32xbf16>
    %132 = arith.truncf %129 : vector<32x32xf32> to vector<32x32xbf16>
    %cst_84 = arith.constant dense<0.000000e+00> : vector<32x32xf32>
    %133 = tpu.matmul %131, %132, %cst_84 {dimension_numbers = #tpu.dot_dimension_numbers<[1], [0], [0], [1], [0, 0, 1, 1], [], []>} : vector<32x32xbf16>, vector<32x32xbf16>, vector<32x32xf32> -> vector<32x32xf32>
    %134 = arith.addf %82, %133 : vector<32x32xf32>
    %c16 = arith.constant 16 : index
    %135 = memref.load %arg5[%c16] : memref<48xf32, #tpu.memory_space<smem>>
    %c0_85 = arith.constant 0 : index
    %c0_86 = arith.constant 0 : index
    %c0_87 = arith.constant 0 : index
    %c0_88 = arith.constant 0 : index
    %136 = vector.load %arg4[%c0_85, %c0_86, %c0_87, %c0_88] : memref<2x8x32x32xf32, #tpu.memory_space<vmem>>, vector<1x1x32x32xf32>
    %137 = vector.shape_cast %136 : vector<1x1x32x32xf32> to vector<32x32xf32>
    %138 = vector.broadcast %135 : f32 to vector<32x32xf32>
    %139 = arith.mulf %138, %137 : vector<32x32xf32>
    %c17 = arith.constant 17 : index
    %140 = memref.load %arg5[%c17] : memref<48xf32, #tpu.memory_space<smem>>
    %c0_89 = arith.constant 0 : index
    %c1_90 = arith.constant 1 : index
    %c0_91 = arith.constant 0 : index
    %c0_92 = arith.constant 0 : index
    %141 = vector.load %arg4[%c0_89, %c1_90, %c0_91, %c0_92] : memref<2x8x32x32xf32, #tpu.memory_space<vmem>>, vector<1x1x32x32xf32>
    %142 = vector.shape_cast %141 : vector<1x1x32x32xf32> to vector<32x32xf32>
    %143 = vector.broadcast %140 : f32 to vector<32x32xf32>
    %144 = arith.mulf %143, %142 : vector<32x32xf32>
    %145 = arith.addf %139, %144 : vector<32x32xf32>
    %c18 = arith.constant 18 : index
    %146 = memref.load %arg5[%c18] : memref<48xf32, #tpu.memory_space<smem>>
    %c0_93 = arith.constant 0 : index
    %c2_94 = arith.constant 2 : index
    %c0_95 = arith.constant 0 : index
    %c0_96 = arith.constant 0 : index
    %147 = vector.load %arg4[%c0_93, %c2_94, %c0_95, %c0_96] : memref<2x8x32x32xf32, #tpu.memory_space<vmem>>, vector<1x1x32x32xf32>
    %148 = vector.shape_cast %147 : vector<1x1x32x32xf32> to vector<32x32xf32>
    %149 = vector.broadcast %146 : f32 to vector<32x32xf32>
    %150 = arith.mulf %149, %148 : vector<32x32xf32>
    %151 = arith.addf %145, %150 : vector<32x32xf32>
    %c19 = arith.constant 19 : index
    %152 = memref.load %arg5[%c19] : memref<48xf32, #tpu.memory_space<smem>>
    %c0_97 = arith.constant 0 : index
    %c3_98 = arith.constant 3 : index
    %c0_99 = arith.constant 0 : index
    %c0_100 = arith.constant 0 : index
    %153 = vector.load %arg4[%c0_97, %c3_98, %c0_99, %c0_100] : memref<2x8x32x32xf32, #tpu.memory_space<vmem>>, vector<1x1x32x32xf32>
    %154 = vector.shape_cast %153 : vector<1x1x32x32xf32> to vector<32x32xf32>
    %155 = vector.broadcast %152 : f32 to vector<32x32xf32>
    %156 = arith.mulf %155, %154 : vector<32x32xf32>
    %157 = arith.addf %151, %156 : vector<32x32xf32>
    %c20 = arith.constant 20 : index
    %158 = memref.load %arg5[%c20] : memref<48xf32, #tpu.memory_space<smem>>
    %c0_101 = arith.constant 0 : index
    %c4_102 = arith.constant 4 : index
    %c0_103 = arith.constant 0 : index
    %c0_104 = arith.constant 0 : index
    %159 = vector.load %arg4[%c0_101, %c4_102, %c0_103, %c0_104] : memref<2x8x32x32xf32, #tpu.memory_space<vmem>>, vector<1x1x32x32xf32>
    %160 = vector.shape_cast %159 : vector<1x1x32x32xf32> to vector<32x32xf32>
    %161 = vector.broadcast %158 : f32 to vector<32x32xf32>
    %162 = arith.mulf %161, %160 : vector<32x32xf32>
    %163 = arith.addf %157, %162 : vector<32x32xf32>
    %c21 = arith.constant 21 : index
    %164 = memref.load %arg5[%c21] : memref<48xf32, #tpu.memory_space<smem>>
    %c0_105 = arith.constant 0 : index
    %c5_106 = arith.constant 5 : index
    %c0_107 = arith.constant 0 : index
    %c0_108 = arith.constant 0 : index
    %165 = vector.load %arg4[%c0_105, %c5_106, %c0_107, %c0_108] : memref<2x8x32x32xf32, #tpu.memory_space<vmem>>, vector<1x1x32x32xf32>
    %166 = vector.shape_cast %165 : vector<1x1x32x32xf32> to vector<32x32xf32>
    %167 = vector.broadcast %164 : f32 to vector<32x32xf32>
    %168 = arith.mulf %167, %166 : vector<32x32xf32>
    %169 = arith.addf %163, %168 : vector<32x32xf32>
    %c22 = arith.constant 22 : index
    %170 = memref.load %arg5[%c22] : memref<48xf32, #tpu.memory_space<smem>>
    %c0_109 = arith.constant 0 : index
    %c6_110 = arith.constant 6 : index
    %c0_111 = arith.constant 0 : index
    %c0_112 = arith.constant 0 : index
    %171 = vector.load %arg4[%c0_109, %c6_110, %c0_111, %c0_112] : memref<2x8x32x32xf32, #tpu.memory_space<vmem>>, vector<1x1x32x32xf32>
    %172 = vector.shape_cast %171 : vector<1x1x32x32xf32> to vector<32x32xf32>
    %173 = vector.broadcast %170 : f32 to vector<32x32xf32>
    %174 = arith.mulf %173, %172 : vector<32x32xf32>
    %175 = arith.addf %169, %174 : vector<32x32xf32>
    %c23 = arith.constant 23 : index
    %176 = memref.load %arg5[%c23] : memref<48xf32, #tpu.memory_space<smem>>
    %c0_113 = arith.constant 0 : index
    %c7_114 = arith.constant 7 : index
    %c0_115 = arith.constant 0 : index
    %c0_116 = arith.constant 0 : index
    %177 = vector.load %arg4[%c0_113, %c7_114, %c0_115, %c0_116] : memref<2x8x32x32xf32, #tpu.memory_space<vmem>>, vector<1x1x32x32xf32>
    %178 = vector.shape_cast %177 : vector<1x1x32x32xf32> to vector<32x32xf32>
    %179 = vector.broadcast %176 : f32 to vector<32x32xf32>
    %180 = arith.mulf %179, %178 : vector<32x32xf32>
    %181 = arith.addf %175, %180 : vector<32x32xf32>
    %182 = vector.extract_strided_slice %21 {offsets = [64, 0], sizes = [32, 32], strides = [1, 1]} : vector<96x32xf32> to vector<32x32xf32>
    %183 = arith.truncf %182 : vector<32x32xf32> to vector<32x32xbf16>
    %184 = arith.truncf %181 : vector<32x32xf32> to vector<32x32xbf16>
    %cst_117 = arith.constant dense<0.000000e+00> : vector<32x32xf32>
    %185 = tpu.matmul %183, %184, %cst_117 {dimension_numbers = #tpu.dot_dimension_numbers<[1], [0], [0], [1], [0, 0, 1, 1], [], []>} : vector<32x32xbf16>, vector<32x32xbf16>, vector<32x32xf32> -> vector<32x32xf32>
    %186 = arith.addf %134, %185 : vector<32x32xf32>
    %cst_118 = arith.constant 0.000000e+00 : f32
    %187 = vector.broadcast %cst_118 : f32 to vector<32x32xf32>
    %188 = arith.maximumf %186, %187 : vector<32x32xf32>
    %189 = arith.mulf %188, %188 : vector<32x32xf32>
    %cst_119 = arith.constant dense<0.000000e+00> : vector<32xf32>
    %190 = vector.multi_reduction <add>, %189, %cst_119 [1] : vector<32x32xf32> to vector<32xf32>
    %191 = vector.shape_cast %190 : vector<32xf32> to vector<32x1xf32>
    %cst_120 = arith.constant 1.000000e-24 : f32
    %192 = vector.broadcast %cst_120 : f32 to vector<32x1xf32>
    %193 = arith.maximumf %191, %192 : vector<32x1xf32>
    %194 = math.rsqrt %193 : vector<32x1xf32>
    %195 = vector.broadcast %194 : vector<32x1xf32> to vector<32x32xf32>
    %196 = arith.mulf %188, %195 : vector<32x32xf32>
    %c0_121 = arith.constant 0 : index
    %c0_122 = arith.constant 0 : index
    %197 = vector.load %arg1[%c0_121, %c0_122] : memref<96x32xf32, #tpu.memory_space<vmem>>, vector<96x32xf32>
    %198 = arith.truncf %197 : vector<96x32xf32> to vector<96x32xbf16>
    %199 = arith.truncf %196 : vector<32x32xf32> to vector<32x32xbf16>
    %cst_123 = arith.constant dense<0.000000e+00> : vector<96x32xf32>
    %200 = tpu.matmul %198, %199, %cst_123 {dimension_numbers = #tpu.dot_dimension_numbers<[1], [0], [0], [1], [0, 0, 1, 1], [], []>} : vector<96x32xbf16>, vector<32x32xbf16>, vector<96x32xf32> -> vector<96x32xf32>
    %c1_124 = arith.constant 1 : index
    %c0_125 = arith.constant 0 : index
    %c0_126 = arith.constant 0 : index
    %201 = vector.load %arg6[%c1_124, %c0_125, %c0_126] : memref<2x32x32xf32, #tpu.memory_space<vmem>>, vector<1x32x32xf32>
    %202 = vector.shape_cast %201 : vector<1x32x32xf32> to vector<32x32xf32>
    %203 = arith.truncf %196 : vector<32x32xf32> to vector<32x32xbf16>
    %204 = arith.truncf %202 : vector<32x32xf32> to vector<32x32xbf16>
    %cst_127 = arith.constant dense<0.000000e+00> : vector<32x32xf32>
    %205 = tpu.matmul %203, %204, %cst_127 {dimension_numbers = #tpu.dot_dimension_numbers<[1], [0], [0], [1], [0, 0, 1, 1], [], []>} : vector<32x32xbf16>, vector<32x32xbf16>, vector<32x32xf32> -> vector<32x32xf32>
    %c1_128 = arith.constant 1 : index
    %c0_129 = arith.constant 0 : index
    %c0_130 = arith.constant 0 : index
    %206 = vector.load %arg7[%c1_128, %c0_129, %c0_130] : memref<2x1x32xf32, #tpu.memory_space<vmem>>, vector<1x1x32xf32>
    %207 = vector.shape_cast %206 : vector<1x1x32xf32> to vector<1x32xf32>
    %208 = vector.broadcast %207 : vector<1x32xf32> to vector<32x32xf32>
    %209 = arith.addf %205, %208 : vector<32x32xf32>
    %c24 = arith.constant 24 : index
    %210 = memref.load %arg5[%c24] : memref<48xf32, #tpu.memory_space<smem>>
    %c1_131 = arith.constant 1 : index
    %c0_132 = arith.constant 0 : index
    %c0_133 = arith.constant 0 : index
    %c0_134 = arith.constant 0 : index
    %211 = vector.load %arg4[%c1_131, %c0_132, %c0_133, %c0_134] : memref<2x8x32x32xf32, #tpu.memory_space<vmem>>, vector<1x1x32x32xf32>
    %212 = vector.shape_cast %211 : vector<1x1x32x32xf32> to vector<32x32xf32>
    %213 = vector.broadcast %210 : f32 to vector<32x32xf32>
    %214 = arith.mulf %213, %212 : vector<32x32xf32>
    %c25 = arith.constant 25 : index
    %215 = memref.load %arg5[%c25] : memref<48xf32, #tpu.memory_space<smem>>
    %c1_135 = arith.constant 1 : index
    %c1_136 = arith.constant 1 : index
    %c0_137 = arith.constant 0 : index
    %c0_138 = arith.constant 0 : index
    %216 = vector.load %arg4[%c1_135, %c1_136, %c0_137, %c0_138] : memref<2x8x32x32xf32, #tpu.memory_space<vmem>>, vector<1x1x32x32xf32>
    %217 = vector.shape_cast %216 : vector<1x1x32x32xf32> to vector<32x32xf32>
    %218 = vector.broadcast %215 : f32 to vector<32x32xf32>
    %219 = arith.mulf %218, %217 : vector<32x32xf32>
    %220 = arith.addf %214, %219 : vector<32x32xf32>
    %c26 = arith.constant 26 : index
    %221 = memref.load %arg5[%c26] : memref<48xf32, #tpu.memory_space<smem>>
    %c1_139 = arith.constant 1 : index
    %c2_140 = arith.constant 2 : index
    %c0_141 = arith.constant 0 : index
    %c0_142 = arith.constant 0 : index
    %222 = vector.load %arg4[%c1_139, %c2_140, %c0_141, %c0_142] : memref<2x8x32x32xf32, #tpu.memory_space<vmem>>, vector<1x1x32x32xf32>
    %223 = vector.shape_cast %222 : vector<1x1x32x32xf32> to vector<32x32xf32>
    %224 = vector.broadcast %221 : f32 to vector<32x32xf32>
    %225 = arith.mulf %224, %223 : vector<32x32xf32>
    %226 = arith.addf %220, %225 : vector<32x32xf32>
    %c27 = arith.constant 27 : index
    %227 = memref.load %arg5[%c27] : memref<48xf32, #tpu.memory_space<smem>>
    %c1_143 = arith.constant 1 : index
    %c3_144 = arith.constant 3 : index
    %c0_145 = arith.constant 0 : index
    %c0_146 = arith.constant 0 : index
    %228 = vector.load %arg4[%c1_143, %c3_144, %c0_145, %c0_146] : memref<2x8x32x32xf32, #tpu.memory_space<vmem>>, vector<1x1x32x32xf32>
    %229 = vector.shape_cast %228 : vector<1x1x32x32xf32> to vector<32x32xf32>
    %230 = vector.broadcast %227 : f32 to vector<32x32xf32>
    %231 = arith.mulf %230, %229 : vector<32x32xf32>
    %232 = arith.addf %226, %231 : vector<32x32xf32>
    %c28 = arith.constant 28 : index
    %233 = memref.load %arg5[%c28] : memref<48xf32, #tpu.memory_space<smem>>
    %c1_147 = arith.constant 1 : index
    %c4_148 = arith.constant 4 : index
    %c0_149 = arith.constant 0 : index
    %c0_150 = arith.constant 0 : index
    %234 = vector.load %arg4[%c1_147, %c4_148, %c0_149, %c0_150] : memref<2x8x32x32xf32, #tpu.memory_space<vmem>>, vector<1x1x32x32xf32>
    %235 = vector.shape_cast %234 : vector<1x1x32x32xf32> to vector<32x32xf32>
    %236 = vector.broadcast %233 : f32 to vector<32x32xf32>
    %237 = arith.mulf %236, %235 : vector<32x32xf32>
    %238 = arith.addf %232, %237 : vector<32x32xf32>
    %c29 = arith.constant 29 : index
    %239 = memref.load %arg5[%c29] : memref<48xf32, #tpu.memory_space<smem>>
    %c1_151 = arith.constant 1 : index
    %c5_152 = arith.constant 5 : index
    %c0_153 = arith.constant 0 : index
    %c0_154 = arith.constant 0 : index
    %240 = vector.load %arg4[%c1_151, %c5_152, %c0_153, %c0_154] : memref<2x8x32x32xf32, #tpu.memory_space<vmem>>, vector<1x1x32x32xf32>
    %241 = vector.shape_cast %240 : vector<1x1x32x32xf32> to vector<32x32xf32>
    %242 = vector.broadcast %239 : f32 to vector<32x32xf32>
    %243 = arith.mulf %242, %241 : vector<32x32xf32>
    %244 = arith.addf %238, %243 : vector<32x32xf32>
    %c30 = arith.constant 30 : index
    %245 = memref.load %arg5[%c30] : memref<48xf32, #tpu.memory_space<smem>>
    %c1_155 = arith.constant 1 : index
    %c6_156 = arith.constant 6 : index
    %c0_157 = arith.constant 0 : index
    %c0_158 = arith.constant 0 : index
    %246 = vector.load %arg4[%c1_155, %c6_156, %c0_157, %c0_158] : memref<2x8x32x32xf32, #tpu.memory_space<vmem>>, vector<1x1x32x32xf32>
    %247 = vector.shape_cast %246 : vector<1x1x32x32xf32> to vector<32x32xf32>
    %248 = vector.broadcast %245 : f32 to vector<32x32xf32>
    %249 = arith.mulf %248, %247 : vector<32x32xf32>
    %250 = arith.addf %244, %249 : vector<32x32xf32>
    %c31 = arith.constant 31 : index
    %251 = memref.load %arg5[%c31] : memref<48xf32, #tpu.memory_space<smem>>
    %c1_159 = arith.constant 1 : index
    %c7_160 = arith.constant 7 : index
    %c0_161 = arith.constant 0 : index
    %c0_162 = arith.constant 0 : index
    %252 = vector.load %arg4[%c1_159, %c7_160, %c0_161, %c0_162] : memref<2x8x32x32xf32, #tpu.memory_space<vmem>>, vector<1x1x32x32xf32>
    %253 = vector.shape_cast %252 : vector<1x1x32x32xf32> to vector<32x32xf32>
    %254 = vector.broadcast %251 : f32 to vector<32x32xf32>
    %255 = arith.mulf %254, %253 : vector<32x32xf32>
    %256 = arith.addf %250, %255 : vector<32x32xf32>
    %257 = vector.extract_strided_slice %200 {offsets = [0, 0], sizes = [32, 32], strides = [1, 1]} : vector<96x32xf32> to vector<32x32xf32>
    %258 = arith.truncf %257 : vector<32x32xf32> to vector<32x32xbf16>
    %259 = arith.truncf %256 : vector<32x32xf32> to vector<32x32xbf16>
    %cst_163 = arith.constant dense<0.000000e+00> : vector<32x32xf32>
    %260 = tpu.matmul %258, %259, %cst_163 {dimension_numbers = #tpu.dot_dimension_numbers<[1], [0], [0], [1], [0, 0, 1, 1], [], []>} : vector<32x32xbf16>, vector<32x32xbf16>, vector<32x32xf32> -> vector<32x32xf32>
    %261 = arith.addf %209, %260 : vector<32x32xf32>
    %c32 = arith.constant 32 : index
    %262 = memref.load %arg5[%c32] : memref<48xf32, #tpu.memory_space<smem>>
    %c1_164 = arith.constant 1 : index
    %c0_165 = arith.constant 0 : index
    %c0_166 = arith.constant 0 : index
    %c0_167 = arith.constant 0 : index
    %263 = vector.load %arg4[%c1_164, %c0_165, %c0_166, %c0_167] : memref<2x8x32x32xf32, #tpu.memory_space<vmem>>, vector<1x1x32x32xf32>
    %264 = vector.shape_cast %263 : vector<1x1x32x32xf32> to vector<32x32xf32>
    %265 = vector.broadcast %262 : f32 to vector<32x32xf32>
    %266 = arith.mulf %265, %264 : vector<32x32xf32>
    %c33 = arith.constant 33 : index
    %267 = memref.load %arg5[%c33] : memref<48xf32, #tpu.memory_space<smem>>
    %c1_168 = arith.constant 1 : index
    %c1_169 = arith.constant 1 : index
    %c0_170 = arith.constant 0 : index
    %c0_171 = arith.constant 0 : index
    %268 = vector.load %arg4[%c1_168, %c1_169, %c0_170, %c0_171] : memref<2x8x32x32xf32, #tpu.memory_space<vmem>>, vector<1x1x32x32xf32>
    %269 = vector.shape_cast %268 : vector<1x1x32x32xf32> to vector<32x32xf32>
    %270 = vector.broadcast %267 : f32 to vector<32x32xf32>
    %271 = arith.mulf %270, %269 : vector<32x32xf32>
    %272 = arith.addf %266, %271 : vector<32x32xf32>
    %c34 = arith.constant 34 : index
    %273 = memref.load %arg5[%c34] : memref<48xf32, #tpu.memory_space<smem>>
    %c1_172 = arith.constant 1 : index
    %c2_173 = arith.constant 2 : index
    %c0_174 = arith.constant 0 : index
    %c0_175 = arith.constant 0 : index
    %274 = vector.load %arg4[%c1_172, %c2_173, %c0_174, %c0_175] : memref<2x8x32x32xf32, #tpu.memory_space<vmem>>, vector<1x1x32x32xf32>
    %275 = vector.shape_cast %274 : vector<1x1x32x32xf32> to vector<32x32xf32>
    %276 = vector.broadcast %273 : f32 to vector<32x32xf32>
    %277 = arith.mulf %276, %275 : vector<32x32xf32>
    %278 = arith.addf %272, %277 : vector<32x32xf32>
    %c35 = arith.constant 35 : index
    %279 = memref.load %arg5[%c35] : memref<48xf32, #tpu.memory_space<smem>>
    %c1_176 = arith.constant 1 : index
    %c3_177 = arith.constant 3 : index
    %c0_178 = arith.constant 0 : index
    %c0_179 = arith.constant 0 : index
    %280 = vector.load %arg4[%c1_176, %c3_177, %c0_178, %c0_179] : memref<2x8x32x32xf32, #tpu.memory_space<vmem>>, vector<1x1x32x32xf32>
    %281 = vector.shape_cast %280 : vector<1x1x32x32xf32> to vector<32x32xf32>
    %282 = vector.broadcast %279 : f32 to vector<32x32xf32>
    %283 = arith.mulf %282, %281 : vector<32x32xf32>
    %284 = arith.addf %278, %283 : vector<32x32xf32>
    %c36 = arith.constant 36 : index
    %285 = memref.load %arg5[%c36] : memref<48xf32, #tpu.memory_space<smem>>
    %c1_180 = arith.constant 1 : index
    %c4_181 = arith.constant 4 : index
    %c0_182 = arith.constant 0 : index
    %c0_183 = arith.constant 0 : index
    %286 = vector.load %arg4[%c1_180, %c4_181, %c0_182, %c0_183] : memref<2x8x32x32xf32, #tpu.memory_space<vmem>>, vector<1x1x32x32xf32>
    %287 = vector.shape_cast %286 : vector<1x1x32x32xf32> to vector<32x32xf32>
    %288 = vector.broadcast %285 : f32 to vector<32x32xf32>
    %289 = arith.mulf %288, %287 : vector<32x32xf32>
    %290 = arith.addf %284, %289 : vector<32x32xf32>
    %c37 = arith.constant 37 : index
    %291 = memref.load %arg5[%c37] : memref<48xf32, #tpu.memory_space<smem>>
    %c1_184 = arith.constant 1 : index
    %c5_185 = arith.constant 5 : index
    %c0_186 = arith.constant 0 : index
    %c0_187 = arith.constant 0 : index
    %292 = vector.load %arg4[%c1_184, %c5_185, %c0_186, %c0_187] : memref<2x8x32x32xf32, #tpu.memory_space<vmem>>, vector<1x1x32x32xf32>
    %293 = vector.shape_cast %292 : vector<1x1x32x32xf32> to vector<32x32xf32>
    %294 = vector.broadcast %291 : f32 to vector<32x32xf32>
    %295 = arith.mulf %294, %293 : vector<32x32xf32>
    %296 = arith.addf %290, %295 : vector<32x32xf32>
    %c38 = arith.constant 38 : index
    %297 = memref.load %arg5[%c38] : memref<48xf32, #tpu.memory_space<smem>>
    %c1_188 = arith.constant 1 : index
    %c6_189 = arith.constant 6 : index
    %c0_190 = arith.constant 0 : index
    %c0_191 = arith.constant 0 : index
    %298 = vector.load %arg4[%c1_188, %c6_189, %c0_190, %c0_191] : memref<2x8x32x32xf32, #tpu.memory_space<vmem>>, vector<1x1x32x32xf32>
    %299 = vector.shape_cast %298 : vector<1x1x32x32xf32> to vector<32x32xf32>
    %300 = vector.broadcast %297 : f32 to vector<32x32xf32>
    %301 = arith.mulf %300, %299 : vector<32x32xf32>
    %302 = arith.addf %296, %301 : vector<32x32xf32>
    %c39 = arith.constant 39 : index
    %303 = memref.load %arg5[%c39] : memref<48xf32, #tpu.memory_space<smem>>
    %c1_192 = arith.constant 1 : index
    %c7_193 = arith.constant 7 : index
    %c0_194 = arith.constant 0 : index
    %c0_195 = arith.constant 0 : index
    %304 = vector.load %arg4[%c1_192, %c7_193, %c0_194, %c0_195] : memref<2x8x32x32xf32, #tpu.memory_space<vmem>>, vector<1x1x32x32xf32>
    %305 = vector.shape_cast %304 : vector<1x1x32x32xf32> to vector<32x32xf32>
    %306 = vector.broadcast %303 : f32 to vector<32x32xf32>
    %307 = arith.mulf %306, %305 : vector<32x32xf32>
    %308 = arith.addf %302, %307 : vector<32x32xf32>
    %309 = vector.extract_strided_slice %200 {offsets = [32, 0], sizes = [32, 32], strides = [1, 1]} : vector<96x32xf32> to vector<32x32xf32>
    %310 = arith.truncf %309 : vector<32x32xf32> to vector<32x32xbf16>
    %311 = arith.truncf %308 : vector<32x32xf32> to vector<32x32xbf16>
    %cst_196 = arith.constant dense<0.000000e+00> : vector<32x32xf32>
    %312 = tpu.matmul %310, %311, %cst_196 {dimension_numbers = #tpu.dot_dimension_numbers<[1], [0], [0], [1], [0, 0, 1, 1], [], []>} : vector<32x32xbf16>, vector<32x32xbf16>, vector<32x32xf32> -> vector<32x32xf32>
    %313 = arith.addf %261, %312 : vector<32x32xf32>
    %c40 = arith.constant 40 : index
    %314 = memref.load %arg5[%c40] : memref<48xf32, #tpu.memory_space<smem>>
    %c1_197 = arith.constant 1 : index
    %c0_198 = arith.constant 0 : index
    %c0_199 = arith.constant 0 : index
    %c0_200 = arith.constant 0 : index
    %315 = vector.load %arg4[%c1_197, %c0_198, %c0_199, %c0_200] : memref<2x8x32x32xf32, #tpu.memory_space<vmem>>, vector<1x1x32x32xf32>
    %316 = vector.shape_cast %315 : vector<1x1x32x32xf32> to vector<32x32xf32>
    %317 = vector.broadcast %314 : f32 to vector<32x32xf32>
    %318 = arith.mulf %317, %316 : vector<32x32xf32>
    %c41 = arith.constant 41 : index
    %319 = memref.load %arg5[%c41] : memref<48xf32, #tpu.memory_space<smem>>
    %c1_201 = arith.constant 1 : index
    %c1_202 = arith.constant 1 : index
    %c0_203 = arith.constant 0 : index
    %c0_204 = arith.constant 0 : index
    %320 = vector.load %arg4[%c1_201, %c1_202, %c0_203, %c0_204] : memref<2x8x32x32xf32, #tpu.memory_space<vmem>>, vector<1x1x32x32xf32>
    %321 = vector.shape_cast %320 : vector<1x1x32x32xf32> to vector<32x32xf32>
    %322 = vector.broadcast %319 : f32 to vector<32x32xf32>
    %323 = arith.mulf %322, %321 : vector<32x32xf32>
    %324 = arith.addf %318, %323 : vector<32x32xf32>
    %c42 = arith.constant 42 : index
    %325 = memref.load %arg5[%c42] : memref<48xf32, #tpu.memory_space<smem>>
    %c1_205 = arith.constant 1 : index
    %c2_206 = arith.constant 2 : index
    %c0_207 = arith.constant 0 : index
    %c0_208 = arith.constant 0 : index
    %326 = vector.load %arg4[%c1_205, %c2_206, %c0_207, %c0_208] : memref<2x8x32x32xf32, #tpu.memory_space<vmem>>, vector<1x1x32x32xf32>
    %327 = vector.shape_cast %326 : vector<1x1x32x32xf32> to vector<32x32xf32>
    %328 = vector.broadcast %325 : f32 to vector<32x32xf32>
    %329 = arith.mulf %328, %327 : vector<32x32xf32>
    %330 = arith.addf %324, %329 : vector<32x32xf32>
    %c43 = arith.constant 43 : index
    %331 = memref.load %arg5[%c43] : memref<48xf32, #tpu.memory_space<smem>>
    %c1_209 = arith.constant 1 : index
    %c3_210 = arith.constant 3 : index
    %c0_211 = arith.constant 0 : index
    %c0_212 = arith.constant 0 : index
    %332 = vector.load %arg4[%c1_209, %c3_210, %c0_211, %c0_212] : memref<2x8x32x32xf32, #tpu.memory_space<vmem>>, vector<1x1x32x32xf32>
    %333 = vector.shape_cast %332 : vector<1x1x32x32xf32> to vector<32x32xf32>
    %334 = vector.broadcast %331 : f32 to vector<32x32xf32>
    %335 = arith.mulf %334, %333 : vector<32x32xf32>
    %336 = arith.addf %330, %335 : vector<32x32xf32>
    %c44 = arith.constant 44 : index
    %337 = memref.load %arg5[%c44] : memref<48xf32, #tpu.memory_space<smem>>
    %c1_213 = arith.constant 1 : index
    %c4_214 = arith.constant 4 : index
    %c0_215 = arith.constant 0 : index
    %c0_216 = arith.constant 0 : index
    %338 = vector.load %arg4[%c1_213, %c4_214, %c0_215, %c0_216] : memref<2x8x32x32xf32, #tpu.memory_space<vmem>>, vector<1x1x32x32xf32>
    %339 = vector.shape_cast %338 : vector<1x1x32x32xf32> to vector<32x32xf32>
    %340 = vector.broadcast %337 : f32 to vector<32x32xf32>
    %341 = arith.mulf %340, %339 : vector<32x32xf32>
    %342 = arith.addf %336, %341 : vector<32x32xf32>
    %c45 = arith.constant 45 : index
    %343 = memref.load %arg5[%c45] : memref<48xf32, #tpu.memory_space<smem>>
    %c1_217 = arith.constant 1 : index
    %c5_218 = arith.constant 5 : index
    %c0_219 = arith.constant 0 : index
    %c0_220 = arith.constant 0 : index
    %344 = vector.load %arg4[%c1_217, %c5_218, %c0_219, %c0_220] : memref<2x8x32x32xf32, #tpu.memory_space<vmem>>, vector<1x1x32x32xf32>
    %345 = vector.shape_cast %344 : vector<1x1x32x32xf32> to vector<32x32xf32>
    %346 = vector.broadcast %343 : f32 to vector<32x32xf32>
    %347 = arith.mulf %346, %345 : vector<32x32xf32>
    %348 = arith.addf %342, %347 : vector<32x32xf32>
    %c46 = arith.constant 46 : index
    %349 = memref.load %arg5[%c46] : memref<48xf32, #tpu.memory_space<smem>>
    %c1_221 = arith.constant 1 : index
    %c6_222 = arith.constant 6 : index
    %c0_223 = arith.constant 0 : index
    %c0_224 = arith.constant 0 : index
    %350 = vector.load %arg4[%c1_221, %c6_222, %c0_223, %c0_224] : memref<2x8x32x32xf32, #tpu.memory_space<vmem>>, vector<1x1x32x32xf32>
    %351 = vector.shape_cast %350 : vector<1x1x32x32xf32> to vector<32x32xf32>
    %352 = vector.broadcast %349 : f32 to vector<32x32xf32>
    %353 = arith.mulf %352, %351 : vector<32x32xf32>
    %354 = arith.addf %348, %353 : vector<32x32xf32>
    %c47 = arith.constant 47 : index
    %355 = memref.load %arg5[%c47] : memref<48xf32, #tpu.memory_space<smem>>
    %c1_225 = arith.constant 1 : index
    %c7_226 = arith.constant 7 : index
    %c0_227 = arith.constant 0 : index
    %c0_228 = arith.constant 0 : index
    %356 = vector.load %arg4[%c1_225, %c7_226, %c0_227, %c0_228] : memref<2x8x32x32xf32, #tpu.memory_space<vmem>>, vector<1x1x32x32xf32>
    %357 = vector.shape_cast %356 : vector<1x1x32x32xf32> to vector<32x32xf32>
    %358 = vector.broadcast %355 : f32 to vector<32x32xf32>
    %359 = arith.mulf %358, %357 : vector<32x32xf32>
    %360 = arith.addf %354, %359 : vector<32x32xf32>
    %361 = vector.extract_strided_slice %200 {offsets = [64, 0], sizes = [32, 32], strides = [1, 1]} : vector<96x32xf32> to vector<32x32xf32>
    %362 = arith.truncf %361 : vector<32x32xf32> to vector<32x32xbf16>
    %363 = arith.truncf %360 : vector<32x32xf32> to vector<32x32xbf16>
    %cst_229 = arith.constant dense<0.000000e+00> : vector<32x32xf32>
    %364 = tpu.matmul %362, %363, %cst_229 {dimension_numbers = #tpu.dot_dimension_numbers<[1], [0], [0], [1], [0, 0, 1, 1], [], []>} : vector<32x32xbf16>, vector<32x32xbf16>, vector<32x32xf32> -> vector<32x32xf32>
    %365 = arith.addf %313, %364 : vector<32x32xf32>
    %cst_230 = arith.constant 0.000000e+00 : f32
    %366 = vector.broadcast %cst_230 : f32 to vector<32x32xf32>
    %367 = arith.maximumf %365, %366 : vector<32x32xf32>
    %368 = arith.mulf %367, %367 : vector<32x32xf32>
    %cst_231 = arith.constant dense<0.000000e+00> : vector<32xf32>
    %369 = vector.multi_reduction <add>, %368, %cst_231 [1] : vector<32x32xf32> to vector<32xf32>
    %370 = vector.shape_cast %369 : vector<32xf32> to vector<32x1xf32>
    %cst_232 = arith.constant 1.000000e-24 : f32
    %371 = vector.broadcast %cst_232 : f32 to vector<32x1xf32>
    %372 = arith.maximumf %370, %371 : vector<32x1xf32>
    %373 = math.rsqrt %372 : vector<32x1xf32>
    %374 = vector.broadcast %373 : vector<32x1xf32> to vector<32x32xf32>
    %375 = arith.mulf %367, %374 : vector<32x32xf32>
    %c0_233 = arith.constant 0 : index
    %c0_234 = arith.constant 0 : index
    %376 = vector.load %arg8[%c0_233, %c0_234] : memref<32x4xf32, #tpu.memory_space<vmem>>, vector<32x4xf32>
    %377 = arith.truncf %375 : vector<32x32xf32> to vector<32x32xbf16>
    %378 = arith.truncf %376 : vector<32x4xf32> to vector<32x4xbf16>
    %cst_235 = arith.constant dense<0.000000e+00> : vector<32x4xf32>
    %379 = tpu.matmul %377, %378, %cst_235 {dimension_numbers = #tpu.dot_dimension_numbers<[1], [0], [0], [1], [0, 0, 1, 1], [], []>} : vector<32x32xbf16>, vector<32x4xbf16>, vector<32x4xf32> -> vector<32x4xf32>
    %c0_236 = arith.constant 0 : index
    %c0_237 = arith.constant 0 : index
    %380 = vector.load %arg9[%c0_236, %c0_237] : memref<1x4xf32, #tpu.memory_space<vmem>>, vector<1x4xf32>
    %381 = vector.broadcast %380 : vector<1x4xf32> to vector<32x4xf32>
    %382 = arith.addf %379, %381 : vector<32x4xf32>
    %c0_238 = arith.constant 0 : index
    %c0_239 = arith.constant 0 : index
    %383 = vector.load %arg10[%c0_238, %c0_239] : memref<32x4xf32, #tpu.memory_space<vmem>>, vector<32x4xf32>
    tpu.vector_store %arg10[%c0_238, %c0_239], %382 {strides = array<i32>} : memref<32x4xf32, #tpu.memory_space<vmem>>, vector<32x4xf32>,
    return
  }
}

</mosaic_0001>

<bundles_post_ra>
// kernel: tpu_custom_call.1
= control target key start
LH: loop header
LB: loop body
LE: loop exit
PB: predicated region body
PF: predicated region fallthrough
CT: control target
= control target key end

     0   :  { %15 = vsyncpa [#allocation3], 0  ;;  %s2677_s0 = inlined_call_operand.vmem [shape: f32[32,32], index: 0, kind: input, shape index: {}]   ;;  %s2678_s1 = inlined_call_operand.vmem [shape: f32[96,32], index: 1, kind: input, shape index: {}]   ;;  %s2679_s2 = inlined_call_operand.vmem [shape: f32[32,32], index: 2, kind: input, shape index: {}]   ;;  %s2680_s3 = inlined_call_operand.vmem [shape: f32[1,32], index: 3, kind: input, shape index: {}]   ;;  %s2681_s4 = inlined_call_operand.hbm [shape: f32[2,8,32,32], index: 4, kind: input, shape index: {}]   ;;  %s2682_s5 = inlined_call_operand.vmem [shape: f32[48], index: 5, kind: input, shape index: {}]   ;;  %s2683_s6 = inlined_call_operand.vmem [shape: f32[2,32,32], index: 6, kind: input, shape index: {}]   ;;  %s2684_s7 = inlined_call_operand.vmem [shape: f32[2,1,32], index: 7, kind: input, shape index: {}]   ;;  %s2685_s8 = inlined_call_operand.vmem [shape: f32[32,4], index: 8, kind: input, shape index: {}]   ;;  %s2686_s9 = inlined_call_operand.vmem [shape: f32[1,4], index: 9, kind: input, shape index: {}]   ;;  %s2687_s10 = inlined_call_operand.vmem [shape: f32[32,4], index: 10, kind: output, shape index: {}]  }
   0x1   :  { %16 = vsyncpa [#allocation4], 0  ;;  %s1888_s13 = smov [#allocation2]   ;;  %s43_s17 = sshll.u32 %s2682_s5, 4  ;;  %s44_s17 = int_to_ptr.vmem [resolvable:$true] %s43_s17 }
   0x2   :  { %s30_s14 = sshll.u32 %s1888_s13, 4  ;;  %s31_s14 = int_to_ptr.vmem [resolvable:$true] %s30_s14 }
   0x3   :  { %s1860_s18 = scalar_lea.vmem %s31_s14, 8192  ;;  %p1865_p1 = scmp.lt.s32.totalorder %s31_s14, %s31_s14 }
   0x4   :  { %p1861_p0 = scmp.ne.s32.totalorder %s31_s14, %s1860_s18  ;;  %p1866_p2 = scmp.lt.s32.totalorder %s1860_s18, %s1860_s18 }
   0x6   :  { %p1867_p3 = por %p1866_p2, %p1865_p1 }
   0x8   :  { %p1868_p4 = pnand %p1867_p3, %p1861_p0 }
   0xa   :  { %1871 = shalt.err (!%p1868_p4)
}
   0xb   :  { %s1889_s19 = smov 128   ;;  %s1890_s20 = smov 8  }
   0xc   :  { %36 = dma.hbm_to_vmem [thread:$0]  %s2681_s4, 8192, %s31_s14, [#allocation3], %s1889_s19, %s1889_s19, %s1890_s20  }
   0xd   :  { %s1872_s23 = scalar_lea.vmem %s44_s17, 16  ;;  %p1877_p6 = scmp.lt.s32.totalorder %s44_s17, %s44_s17 }
   0xe   :  { %p1873_p5 = scmp.ne.s32.totalorder %s44_s17, %s1872_s23  ;;  %p1878_p7 = scmp.lt.s32.totalorder %s1872_s23, %s1872_s23 }
  0x10   :  { %p1879_p8 = por %p1878_p7, %p1877_p6 }
  0x12   :  { %p1880_p9 = pnand %p1879_p8, %p1873_p5 }
  0x14   :  { %1883 = shalt.err (!%p1880_p9)
}
  0x15   :  { %s1891_s5 = smov [#allocation5]  }
  0x16   :  { %46 = dma.vmem_to_smem %s44_s17, 16, %s1891_s5, [#allocation4]  }
  0x17   :  { %1884 = dma.done.wait [#allocation3], 8192  }
  0x18   :  { %1885 = vsyncadd [#allocation3], 4294959104 }
  0x19   :  { %1886 = dma.done.wait [#allocation4], 16  }
  0x1a   :  { %1887 = vsyncadd [#allocation4], 4294967280 }
  0x1b   :  { %61 = sfence }
  0x1c   :  { %v69_v0 = vld [vmem:[%s2679_s2 + $0x10] sm:$0xff]  ;;  %v70_v1 = vld [vmem:[%s2679_s2 + $0x18] sm:$0xff]  ;;  %v67_v2 = vld [vmem:[%s2679_s2] sm:$0xff]  ;;  %vm82_vm0 = vcmask 261120   ;;  %s357_s24 = sld [smem:[#allocation5]]  ;;  %vm1557_vm1 = vcmask 31744  }
  0x1d   :  { %v74_v3 = vpack.c.bf16 %v70_v1, %v69_v0  ;;  %v68_v4 = vld [vmem:[%s2679_s2 + $0x8] sm:$0xff]  ;;  %v63_v5 = vld [vmem:[%s2677_s0] sm:$0xff]  ;;  %v65_v9 = vld [vmem:[%s2677_s0 + $0x10] sm:$0xff]  ;;  %s1580_s25 = sld [smem:[#allocation5 + $0x1]] }
  0x1e   :  { %v64_v6 = vld [vmem:[%s2677_s0 + $0x8] sm:$0xff]  ;;  %v73_v7 = vpack.c.bf16 %v68_v4, %v67_v2  ;;  %v66_v10 = vld [vmem:[%s2677_s0 + $0x18] sm:$0xff]  ;;  %v1568_v12 = vld [vmem:[%s2680_s3] ss:$0 sm:$0xff]  ;;  %s1581_s4 = sld [smem:[#allocation5 + $0x2]] }
  0x1f   :  { %v71_v8 = vpack.c.bf16 %v64_v6, %v63_v5  ;;  %1712 = vmatprep.subr.bf16.mxu0 %v74_v3  ;;  %v72_v11 = vpack.c.bf16 %v66_v10, %v65_v9  ;;  %v291_v33 = vld [vmem:[%s2683_s6 + $0x10] sm:$0xff]  ;;  %v292_v34 = vld [vmem:[%s2683_s6 + $0x18] sm:$0xff]  ;;  %v289_v35 = vld [vmem:[%s2683_s6] sm:$0xff]  ;;  %s1582_s26 = sld [smem:[#allocation5 + $0x3]] }
  0x20   :  { %1713 = vmatpush3.bf16.msra.mxu0 %v74_v3  ;;  %v294_v36 = vpack.c.bf16 %v292_v34, %v291_v33  ;;  %v290_v37 = vld [vmem:[%s2683_s6 + $0x8] sm:$0xff]  ;;  %v170_v39 = vld [vmem:[%s2678_s1] sm:$0xff]  ;;  %v172_v60 = vld [vmem:[%s2678_s1 + $0x10] sm:$0xff]  ;;  %s1583_s27 = sld [smem:[#allocation5 + $0x4]] }
  0x21   :  { %1716 = vmatprep.mubr.msk.bf16.mxu0 %vm82_vm0, %v71_v8  ;;  %1714 = vmatprep.subr.bf16.mxu0 %v73_v7  ;;  %v293_v38 = vpack.c.bf16 %v290_v37, %v289_v35  ;;  %v171_v40 = vld [vmem:[%s2678_s1 + $0x8] sm:$0xff]  ;;  %v173_v61 = vld [vmem:[%s2678_s1 + $0x18] sm:$0xff]  ;;  %v174_v62 = vld [vmem:[%s2678_s1 + $0x20] sm:$0xff]  ;;  %s2084_s28 = sld [smem:[#allocation5 + $0x6]] }
  0x22   :  { %v2004_v41 = vpack.c.bf16 %v171_v40, %v170_v39  ;;  %v175_v63 = vld [vmem:[%s2678_s1 + $0x28] sm:$0xff]  ;;  %v2022_v0 = vpack.c.bf16 %v173_v61, %v172_v60  ;;  %v176_v2 = vld [vmem:[%s2678_s1 + $0x30] sm:$0xff]  ;;  %v177_v3 = vld [vmem:[%s2678_s1 + $0x38] sm:$0xff]  ;;  %s2101_s29 = sld [smem:[#allocation5 + $0x7]] }
  0x23   :  { %v2024_v1 = vpack.c.bf16 %v175_v63, %v174_v62  ;;  %v178_v4 = vld [vmem:[%s2678_s1 + $0x40] sm:$0xff]  ;;  %v179_v5 = vld [vmem:[%s2678_s1 + $0x48] sm:$0xff]  ;;  %v2042_v6 = vpack.c.bf16 %v177_v3, %v176_v2  ;;  %v180_v8 = vld [vmem:[%s2678_s1 + $0x50] sm:$0xff]  ;;  %s2122_s30 = sld [smem:[#allocation5 + $0x8]] }
  0x24   :  { %1715 = vmatpush3.bf16.msra.mxu0 %v73_v7  ;;  %1724 = vmatprep.mubr.msk.bf16.mxu1 %vm82_vm0, %v2004_v41  ;;  %2693 = vst [vmem:[#allocation8_spill] sm:$0xff] %v2022_v0  ;;  %v2044_v7 = vpack.c.bf16 %v179_v5, %v178_v4  ;;  %v181_v9 = vld [vmem:[%s2678_s1 + $0x58] sm:$0xff]  ;;  %s2076_s1 = sld [smem:[#allocation5 + $0x5]]  ;;  %v2090_v34 = vld [vmem:[#allocation2 + $0x8] sm:$0xff]  ;;  %v2097_v40 = vld [vmem:[#allocation2 + $0x90] sm:$0xff] }
  0x25   :  { %1736 = vmatprep.subr.bf16.mxu0 %v294_v36  ;;  %2694 = vst [vmem:[#allocation9_spill] sm:$0xff] %v2024_v1  ;;  %2695 = vst [vmem:[#allocation10_spill] sm:$0xff] %v2042_v6  ;;  %v2056_v10 = vpack.c.bf16 %v181_v9, %v180_v8  ;;  %v2095_v37 = vld [vmem:[#allocation2 + $0x28] sm:$0xff]  ;;  %v2124_v2 = vld [vmem:[#allocation2 + $0xd0] sm:$0xff]  ;;  %s2131_s11 = sld [smem:[#allocation5 + $0x10]] }
  0x26   :  { %2696 = vst [vmem:[#allocation11_spill] sm:$0xff] %v2044_v7  ;;  %v2126_v3 = vld [vmem:[#allocation2 + $0xd8] sm:$0xff]  ;;  %v2134_v8 = vld [vmem:[#allocation2 + $0x68] sm:$0xff]  ;;  %s2140_s12 = sld [smem:[#allocation5 + $0x11]] }
  0x27   :  { %1717 = vmatmul.mubr.msk.bf16.vlgmr.msra.gmra.mxu0 %vm82_vm0, %v72_v11  ;;  %2697 = vst [vmem:[#allocation12_spill] sm:$0xff] %v2056_v10  ;;  %v2060_v11 = vld [vmem:[#allocation2 + $0x10] sm:$0xff]  ;;  %v2129_v4 = vstv %s2084_s28  ;;  %s2152_s13 = sld [smem:[#allocation5 + $0x12]] }
  0x28   :  { %1737 = vmatpush3.bf16.msra.mxu0 %v294_v36  ;;  %v2093_v36 = vld [vmem:[#allocation2 + $0x20] sm:$0xff]  ;;  %v451_v9 = vmul.f32 %v2129_v4, %v2124_v2  ;;  %s2161_s14 = sld [smem:[#allocation5 + $0x9]] }
  0x29   :  { %1738 = vmatprep.subr.bf16.mxu0 %v293_v38  ;;  %s2163_s15 = sld [smem:[#allocation5 + $0x13]] }
  0x2a   :  { %s2173_s16 = sld [smem:[#allocation5 + $0xa]] }
  0x2b   :  { %s2178_s2 = sld [smem:[#allocation5 + $0x14]] }
  0x2c   :  { %1739 = vmatpush3.bf16.msra.mxu0 %v293_v38  ;;  %s2189_s17 = sld [smem:[#allocation5 + $0xb]] }
  0x2d   :  { %s1604_s18 = sld [smem:[#allocation5 + $0x15]] }
  0x2e   :  { %s2204_s19 = sld [smem:[#allocation5 + $0x16]] }
  0x2f   :  { %s2209_s0 = sld [smem:[#allocation5 + $0x17]] }
  0x30   :  { %s2220_s3 = sld [smem:[#allocation5 + $0xc]] }
  0x31   :  { %s2233_s20 = sld [smem:[#allocation5 + $0xd]] }
  0x32   :  { %s2242_s21 = sld [smem:[#allocation5 + $0xe]] }
  0x33   :  { %s2253_s22 = sld [smem:[#allocation5 + $0xf]] }
  0x34   :  { %s1648_s23 = sld [smem:[#allocation5 + $0x2d]] }
  0x35   :  { %s2511_s5 = sld [smem:[#allocation5 + $0x2e]] }
  0xe7   :  { %v1718_v13 = vpop.f32.mrf.mxu0 }
  0xe8   :  { %v132_v14 = vadd.f32 %v1718_v13, %v1568_v12  ;;  %v362_v13 = vstv %s357_s24  ;;  %s2516_s24 = sld [smem:[#allocation5 + $0x2f]] }
  0xe9   :  { %v123_v15 = vpop.f32.mrf.mxu0 }
  0xea   :  { %v140_v16 = vmax.f32 %v132_v14, 0.0  ;;  %v124_v17 = vadd.f32 %v1568_v12, %v123_v15  ;;  %v2064_v14 = vld [vmem:[#allocation2 + $0x30] sm:$0xff]  ;;  %v365_v15 = vmul.f32 %v362_v13, %v2060_v11 }
  0xeb   :  { %v1719_v18 = vpop.f32.mrf.mxu0 }
  0xec   :  { %v138_v19 = vmax.f32 %v124_v17, 0.0  ;;  %v135_v20 = vadd.f32 %v1719_v18, %v1568_v12  ;;  %v144_v21 = vmul.f32 %v140_v16, %v140_v16  ;;  %v2068_v17 = vld [vmem:[#allocation2 + $0x38] sm:$0xff]  ;;  %v373_v18 = vstv %s1580_s25  ;;  %s2527_s25 = sld [smem:[#allocation5 + $0x24]] }
  0xed   :  { %v126_v22 = vpop.f32.mrf.mxu0 }
  0xee   :  { %v141_v23 = vmax.f32 %v135_v20, 0.0  ;;  %v127_v24 = vadd.f32 %v1568_v12, %v126_v22  ;;  %v152_v25 = vsel %vm82_vm0, %v144_v21, 0.0  ;;  %v142_v26 = vmul.f32 %v138_v19, %v138_v19  ;;  %v2062_v12 = vld [vmem:[#allocation2 + $0x18] sm:$0xff]  ;;  %v2072_v21 = vld [vmem:[#allocation2 + $0x50] sm:$0xff] }
  0xef   :  { %153 = vadd.xlane.f32.xlu0 %v152_v25  ;;  %v377_v20 = vmul.f32 %v373_v18, %v2068_v17  ;;  %v2074_v22 = vld [vmem:[#allocation2 + $0x58] sm:$0xff] }
  0xf0   :  { %v139_v27 = vmax.f32 %v127_v24, 0.0  ;;  %v146_v28 = vsel %vm82_vm0, %v142_v26, 0.0  ;;  %v145_v29 = vmul.f32 %v141_v23, %v141_v23 }
  0xf1   :  { %147 = vadd.xlane.f32.xlu1 %v146_v28  ;;  %v2080_v28 = vld [vmem:[#allocation2 + $0x70] sm:$0xff] }
  0xf2   :  { %v155_v30 = vsel %vm82_vm0, %v145_v29, 0.0  ;;  %v143_v31 = vmul.f32 %v139_v27, %v139_v27  ;;  %v2082_v29 = vld [vmem:[#allocation2 + $0x78] sm:$0xff] }
  0xf3   :  { %156 = vadd.xlane.f32.xlu0 %v155_v30  ;;  %v403_v30 = vstv %s1582_s26  ;;  %s2549_s26 = sld [smem:[#allocation5 + $0x26]] }
  0xf4   :  { %v149_v32 = vsel %vm82_vm0, %v143_v31, 0.0  ;;  %v2086_v31 = vld [vmem:[#allocation2] sm:$0xff]  ;;  %v407_v33 = vmul.f32 %v403_v30, %v2082_v29 }
  0xf5   :  { %150 = vadd.xlane.f32.xlu1 %v149_v32  ;;  %v406_v32 = vmul.f32 %v403_v30, %v2080_v28  ;;  %v363_v35 = vmul.f32 %v362_v13, %v2086_v31 }
 0x178   :  { %v154_v42 = vpop.xlane.xlu0 %153 }
 0x179   :  { %v160_v43 = vmax.f32 %v154_v42, 1e-24  ;;  %v2099_v42 = vld [vmem:[#allocation2 + $0x98] sm:$0xff] }
 0x17a   :  { %v148_v44 = vpop.xlane.xlu1 %147 }
 0x17b   :  { %v158_v45 = vmax.f32 %v148_v44, 1e-24  ;;  %1828 = vrsqrt.f32 %v160_v43  ;;  %v418_v43 = vstv %s1583_s27  ;;  %v364_v44 = vmul.f32 %v362_v13, %v2090_v34  ;;  %s2560_s27 = sld [smem:[#allocation5 + $0x27]] }
 0x17c   :  { %v157_v46 = vpop.xlane.xlu0 %156 }
 0x17d   :  { %v161_v47 = vmax.f32 %v157_v46, 1e-24  ;;  %1830 = vrsqrt.f32 %v158_v45  ;;  %v2104_v45 = vld [vmem:[#allocation2 + $0x40] sm:$0xff]  ;;  %v421_v46 = vmul.f32 %v418_v43, %v2097_v40 }
 0x17e   :  { %v151_v48 = vpop.xlane.xlu1 %150 }
 0x17f   :  { %1832 = vrsqrt.f32 %v161_v47  ;;  %v159_v49 = vmax.f32 %v151_v48, 1e-24  ;;  %v422_v47 = vmul.f32 %v418_v43, %v2099_v42  ;;  %v374_v48 = vmul.f32 %v373_v18, %v2093_v36 }
 0x181   :  { %1834 = vrsqrt.f32 %v159_v49  ;;  %v375_v49 = vmul.f32 %v373_v18, %v2095_v37  ;;  %v378_v60 = vadd.f32 %v374_v48, %v363_v35  ;;  %v405_v35 = vmul.f32 %v403_v30, %v2134_v8 }
 0x183   :  { %v379_v61 = vadd.f32 %v375_v49, %v364_v44  ;;  %v2159_v44 = vld [vmem:[#allocation2 + $0xa8] sm:$0xff] }
 0x188   :  { %v1829_v50 = vpop.eup %1828 }
 0x189   :  { %v168_v53 = vmul.f32 %v1829_v50, %v140_v16  ;;  %v366_v16 = vmul.f32 %v362_v13, %v2062_v12  ;;  %v2110_v50 = vld [vmem:[#allocation2 + $0x48] sm:$0xff]  ;;  %v452_v13 = vmul.f32 %v2129_v4, %v2126_v3 }
 0x18a   :  { %v1831_v51 = vpop.eup %1830 }
 0x18b   :  { %v166_v57 = vmul.f32 %v1831_v51, %v138_v19  ;;  %v376_v19 = vmul.f32 %v373_v18, %v2064_v14  ;;  %v2143_v18 = vld [vmem:[#allocation2 + $0x80] sm:$0xff] }
 0x18c   :  { %v1833_v52 = vpop.eup %1832  ;;  %v419_v48 = vmul.f32 %v418_v43, %v2143_v18 }
 0x18d   :  { %v169_v54 = vmul.f32 %v1833_v52, %v141_v23  ;;  %v388_v23 = vstv %s1581_s4  ;;  %v380_v26 = vadd.f32 %v376_v19, %v365_v15  ;;  %v2145_v19 = vld [vmem:[#allocation2 + $0x88] sm:$0xff]  ;;  %s2540_s4 = sld [smem:[#allocation5 + $0x25]] }
 0x18e   :  { %v1835_v55 = vpop.eup %1834  ;;  %v391_v24 = vmul.f32 %v388_v23, %v2072_v21  ;;  %v392_v25 = vmul.f32 %v388_v23, %v2074_v22  ;;  %v390_v5 = vmul.f32 %v388_v23, %v2110_v50  ;;  %v420_v49 = vmul.f32 %v418_v43, %v2145_v19 }
 0x18f   :  { %v189_v56 = vpack.c.bf16 %v169_v54, %v168_v53  ;;  %v167_v58 = vmul.f32 %v1835_v55, %v139_v27  ;;  %v381_v27 = vadd.f32 %v377_v20, %v366_v16  ;;  %v2112_v53 = vld [vmem:[#allocation2 + $0xb0] sm:$0xff]  ;;  %v2114_v54 = vld [vmem:[#allocation2 + $0xb8] sm:$0xff]  ;;  %v433_v55 = vstv %s2076_s1 }
 0x190   :  { %v395_v38 = vadd.f32 %v391_v24, %v380_v26  ;;  %v463_v26 = vstv %s2101_s29 }
 0x191   :  { %1720 = vmatprep.subr.bf16.mxu1 %v189_v56  ;;  %v188_v59 = vpack.c.bf16 %v167_v58, %v166_v57  ;;  %v396_v39 = vadd.f32 %v392_v25, %v381_v27  ;;  %v2118_v57 = vld [vmem:[#allocation2 + $0x60] sm:$0xff]  ;;  %v436_v58 = vmul.f32 %v433_v55, %v2112_v53  ;;  %v2149_v25 = vld [vmem:[#allocation2 + $0xf8] sm:$0xff]  ;;  %v394_v27 = vadd.f32 %v390_v5, %v379_v61 }
 0x192   :  { %1721 = vmatpush3.bf16.msra.mxu1 %v189_v56  ;;  %v410_v51 = vadd.f32 %v406_v32, %v395_v38  ;;  %v404_v16 = vmul.f32 %v403_v30, %v2118_v57  ;;  %v2176_v61 = vstv %s2131_s11  ;;  %s1625_s11 = sld [smem:[#allocation5 + $0x1a]] }
 0x193   :  { %1722 = vmatprep.subr.bf16.mxu1 %v188_v59  ;;  %1740 = vmatprep.mubr.msk.bf16.mxu0 %vm82_vm0, %v188_v59  ;;  %v411_v52 = vadd.f32 %v407_v33, %v396_v39  ;;  %v467_v33 = vmul.f32 %v463_v26, %v2149_v25  ;;  %v2157_v39 = vld [vmem:[#allocation2 + $0xa0] sm:$0xff]  ;;  %v409_v30 = vadd.f32 %v405_v35, %v394_v27 }
 0x194   :  { %1741 = vmatmul.mubr.msk.bf16.vlgmr.msra.gmra.mxu0 %vm82_vm0, %v189_v56  ;;  %v389_v56 = vmul.f32 %v388_v23, %v2104_v45  ;;  %v425_v62 = vadd.f32 %v421_v46, %v410_v51  ;;  %v2147_v23 = vld [vmem:[#allocation2 + $0xf0] sm:$0xff]  ;;  %v2167_v51 = vld [vmem:[#allocation2 + $0xc0] sm:$0xff] }
 0x195   :  { %v426_v63 = vadd.f32 %v422_v47, %v411_v52  ;;  %v466_v32 = vmul.f32 %v463_v26, %v2147_v23  ;;  %v434_v52 = vmul.f32 %v433_v55, %v2157_v39  ;;  %v424_v5 = vadd.f32 %v420_v49, %v409_v30  ;;  %v2213_v49 = vld [vmem:[#allocation2 + $0xe8] sm:$0xff] }
 0x196   :  { %1723 = vmatpush3.bf16.msra.mxu1 %v188_v59  ;;  %v437_v59 = vmul.f32 %v433_v55, %v2114_v54  ;;  %v393_v15 = vadd.f32 %v389_v56, %v378_v60  ;;  %v440_v20 = vadd.f32 %v436_v58, %v425_v62  ;;  %v435_v56 = vmul.f32 %v433_v55, %v2159_v44 }
 0x197   :  { %v449_v58 = vmul.f32 %v2129_v4, %v2167_v51  ;;  %v678_v62 = vmul.f32 %v2176_v61, %v2060_v11  ;;  %v2185_v55 = vstv %s2140_s12  ;;  %s1626_s12 = sld [smem:[#allocation5 + $0x1b]] }
 0x198   :  { %v441_v24 = vadd.f32 %v437_v59, %v426_v63  ;;  %v408_v38 = vadd.f32 %v404_v16, %v393_v15  ;;  %v455_v46 = vadd.f32 %v451_v9, %v440_v20  ;;  %v679_v63 = vmul.f32 %v2176_v61, %v2062_v12  ;;  %v2187_v9 = vld [vmem:[#allocation2 + $0xc8] sm:$0xff] }
 0x199   :  { %1725 = vmatmul.mubr.msk.bf16.vlgmr.msra.gmra.mxu1 %vm82_vm0, %v2022_v0  ;;  %v684_v15 = vmul.f32 %v2185_v55, %v2064_v14  ;;  %v685_v16 = vmul.f32 %v2185_v55, %v2068_v17  ;;  %v2196_v20 = vstv %s2152_s13  ;;  %v439_v35 = vadd.f32 %v435_v56, %v424_v5  ;;  %s1627_s13 = sld [smem:[#allocation5 + $0x1c]] }
 0x19a   :  { %1728 = vmatprep.mubr.msk.bf16.mxu1 %vm82_vm0, %v2024_v1  ;;  %v456_v47 = vadd.f32 %v452_v13, %v441_v24  ;;  %v470_v59 = vadd.f32 %v466_v32, %v455_v46  ;;  %v423_v43 = vadd.f32 %v419_v48, %v408_v38  ;;  %v2198_v24 = vld [vmem:[#allocation2 + $0xe0] sm:$0xff]  ;;  %v694_v27 = vmul.f32 %v2196_v20, %v2072_v21 }
 0x19b   :  { %v695_v32 = vmul.f32 %v2196_v20, %v2074_v22  ;;  %v688_v38 = vadd.f32 %v684_v15, %v678_v62  ;;  %v689_v46 = vadd.f32 %v685_v16, %v679_v63  ;;  %v450_v48 = vmul.f32 %v2129_v4, %v2187_v9 }
 0x19c   :  { %v471_v60 = vadd.f32 %v467_v33, %v456_v47  ;;  %v438_v33 = vadd.f32 %v434_v52, %v423_v43  ;;  %v2207_v47 = vstv %s2163_s15  ;;  %v2223_v62 = vstv %s2178_s2  ;;  %s2391_s15 = sld [smem:[#allocation5 + $0x1e]] }
 0x19d   :  { %v704_v30 = vmul.f32 %v2207_v47, %v2080_v28  ;;  %v705_v52 = vmul.f32 %v2207_v47, %v2082_v29  ;;  %v699_v43 = vadd.f32 %v695_v32, %v689_v46  ;;  %v454_v4 = vadd.f32 %v450_v48, %v439_v35  ;;  %s2429_s2 = sld [smem:[#allocation5 + $0x20]] }
 0x19e   :  { %v475_v13 = vpack.c.bf16 %v471_v60, %v470_v59  ;;  %v453_v56 = vadd.f32 %v449_v58, %v438_v33  ;;  %v464_v59 = vmul.f32 %v463_v26, %v2198_v24  ;;  %v698_v60 = vadd.f32 %v694_v27, %v688_v38 }
 0x19f   :  { %v714_v63 = vmul.f32 %v2223_v62, %v2097_v40  ;;  %v715_v5 = vmul.f32 %v2223_v62, %v2099_v42  ;;  %v465_v15 = vmul.f32 %v463_v26, %v2213_v49  ;;  %v709_v16 = vadd.f32 %v705_v52, %v699_v43 }
 0x1a0   :  { %1744 = vmatprep.subr.bf16.mxu0 %v475_v13  ;;  %v468_v58 = vadd.f32 %v464_v59, %v453_v56  ;;  %v2230_v33 = vstv %s1604_s18  ;;  %v2240_v35 = vstv %s2204_s19  ;;  %v2249_v52 = vstv %s2209_s0  ;;  %s2447_s18 = sld [smem:[#allocation5 + $0x29]] }
 0x1a1   :  { %1729 = vmatmul.mubr.msk.bf16.gmra.mxu1 %vm82_vm0, %v2042_v6  ;;  %1745 = vmatpush3.bf16.msra.mxu0 %v475_v13  ;;  %v708_v13 = vadd.f32 %v704_v30, %v698_v60  ;;  %v724_v27 = vmul.f32 %v2230_v33, %v2112_v53  ;;  %v725_v32 = vmul.f32 %v2230_v33, %v2114_v54  ;;  %s2459_s19 = sld [smem:[#allocation5 + $0x2a]] }
 0x1a2   :  { %1732 = vmatprep.mubr.msk.bf16.mxu1 %vm82_vm0, %v2044_v7  ;;  %v469_v38 = vadd.f32 %v465_v15, %v454_v4  ;;  %v719_v46 = vadd.f32 %v715_v5, %v709_v16  ;;  %v734_v48 = vmul.f32 %v2240_v35, %v2124_v2  ;;  %v735_v30 = vmul.f32 %v2240_v35, %v2126_v3  ;;  %s2468_s0 = sld [smem:[#allocation5 + $0x21]] }
 0x1a3   :  { %v718_v26 = vadd.f32 %v714_v63, %v708_v13  ;;  %v744_v63 = vmul.f32 %v2249_v52, %v2147_v23  ;;  %v745_v5 = vmul.f32 %v2249_v52, %v2149_v25  ;;  %v542_v15 = vstv %s2161_s14  ;;  %s2383_s14 = sld [smem:[#allocation5 + $0x1d]] }
 0x1a4   :  { %v474_v56 = vpack.c.bf16 %v469_v38, %v468_v58  ;;  %v729_v4 = vadd.f32 %v725_v32, %v719_v46  ;;  %v552_v13 = vstv %s2173_s16  ;;  %v562_v16 = vstv %s2189_s17  ;;  %s2408_s16 = sld [smem:[#allocation5 + $0x1f]] }
 0x1a5   :  { %v728_v43 = vadd.f32 %v724_v27, %v718_v26  ;;  %v572_v7 = vstv %s2220_s3  ;;  %v546_v27 = vmul.f32 %v542_v15, %v2068_v17  ;;  %v555_v32 = vmul.f32 %v552_v13, %v2072_v21  ;;  %s2438_s17 = sld [smem:[#allocation5 + $0x28]] }
 0x1a6   :  { %1746 = vmatprep.subr.bf16.mxu0 %v474_v56  ;;  %v556_v38 = vmul.f32 %v552_v13, %v2074_v22  ;;  %v565_v26 = vmul.f32 %v562_v16, %v2080_v28  ;;  %v566_v46 = vmul.f32 %v562_v16, %v2082_v29  ;;  %s2470_s3 = sld [smem:[#allocation5 + $0x2b]] }
 0x1a7   :  { %v738_v58 = vadd.f32 %v734_v48, %v728_v43  ;;  %1747 = vmatpush3.bf16.msra.mxu0 %v474_v56  ;;  %v576_v56 = vmul.f32 %v572_v7, %v2099_v42  ;;  %v592_v43 = vstv %s2242_s21  ;;  %s2485_s21 = sld [smem:[#allocation5 + $0x2c]] }
 0x1a8   :  { %v595_v29 = vmul.f32 %v592_v43, %v2124_v2 }
 0x1a9   :  { %1733 = vmatmul.mubr.msk.bf16.gmra.mxu1 %vm82_vm0, %v2056_v10  ;;  %v536_v10 = vstv %s2122_s30  ;;  %v748_v6 = vadd.f32 %v744_v63, %v738_v58  ;;  %v596_v63 = vmul.f32 %v592_v43, %v2126_v3  ;;  %v553_v3 = vmul.f32 %v552_v13, %v2104_v45  ;;  %s1624_s30 = sld [smem:[#allocation5 + $0x19]] }
 0x1aa   :  { %v539_v59 = vmul.f32 %v536_v10, %v2060_v11  ;;  %v540_v60 = vmul.f32 %v536_v10, %v2062_v12  ;;  %v739_v11 = vadd.f32 %v735_v30, %v729_v4  ;;  %v545_v12 = vmul.f32 %v542_v15, %v2064_v14 }
 0x1ab   :  { %v575_v30 = vmul.f32 %v572_v7, %v2097_v40  ;;  %v582_v14 = vstv %s2233_s20  ;;  %v554_v58 = vmul.f32 %v552_v13, %v2110_v50  ;;  %s2480_s20 = sld [smem:[#allocation5 + $0x22]] }
 0x1ac   :  { %v749_v1 = vadd.f32 %v745_v5, %v739_v11  ;;  %v549_v0 = vadd.f32 %v545_v12, %v539_v59  ;;  %v550_v48 = vadd.f32 %v546_v27, %v540_v60  ;;  %v585_v22 = vmul.f32 %v582_v14, %v2112_v53 }
 0x1ad   :  { %v586_v28 = vmul.f32 %v582_v14, %v2114_v54  ;;  %v602_v5 = vstv %s2253_s22  ;;  %v544_v53 = vmul.f32 %v542_v15, %v2095_v37  ;;  %s2496_s22 = sld [smem:[#allocation5 + $0x23]] }
 0x1ae   :  { %v753_v17 = vpack.c.bf16 %v749_v1, %v748_v6  ;;  %v559_v4 = vadd.f32 %v555_v32, %v549_v0  ;;  %v560_v21 = vadd.f32 %v556_v38, %v550_v48  ;;  %v605_v40 = vmul.f32 %v602_v5, %v2147_v23 }
 0x1af   :  { %v606_v42 = vmul.f32 %v602_v5, %v2149_v25  ;;  %v537_v0 = vmul.f32 %v536_v10, %v2086_v31  ;;  %v538_v1 = vmul.f32 %v536_v10, %v2090_v34  ;;  %v543_v6 = vmul.f32 %v542_v15, %v2093_v36 }
 0x1b0   :  { %1760 = vmatprep.subr.bf16.mxu1 %v753_v17  ;;  %v569_v59 = vadd.f32 %v565_v26, %v559_v4  ;;  %v570_v60 = vadd.f32 %v566_v46, %v560_v21  ;;  %v563_v23 = vmul.f32 %v562_v16, %v2118_v57  ;;  %v564_v25 = vmul.f32 %v562_v16, %v2134_v8 }
 0x1b1   :  { %1761 = vmatpush3.bf16.msra.mxu1 %v753_v17  ;;  %v547_v11 = vadd.f32 %v543_v6, %v537_v0  ;;  %v548_v12 = vadd.f32 %v544_v53, %v538_v1  ;;  %v573_v10 = vmul.f32 %v572_v7, %v2143_v18  ;;  %v574_v38 = vmul.f32 %v572_v7, %v2145_v19 }
 0x1b2   :  { %v579_v54 = vadd.f32 %v575_v30, %v569_v59  ;;  %v580_v2 = vadd.f32 %v576_v56, %v570_v60  ;;  %v583_v46 = vmul.f32 %v582_v14, %v2157_v39  ;;  %v584_v48 = vmul.f32 %v582_v14, %v2159_v44 }
 0x1b3   :  { %v557_v26 = vadd.f32 %v553_v3, %v547_v11  ;;  %v558_v15 = vadd.f32 %v554_v58, %v548_v12  ;;  %v593_v56 = vmul.f32 %v592_v43, %v2167_v51  ;;  %v594_v17 = vmul.f32 %v592_v43, %v2187_v9 }
 0x1b4   :  { %v589_v27 = vadd.f32 %v585_v22, %v579_v54  ;;  %v590_v32 = vadd.f32 %v586_v28, %v580_v2  ;;  %v603_v21 = vmul.f32 %v602_v5, %v2198_v24  ;;  %v604_v22 = vmul.f32 %v602_v5, %v2213_v49 }
 0x1b5   :  { %v567_v4 = vadd.f32 %v563_v23, %v557_v26  ;;  %v568_v16 = vadd.f32 %v564_v25, %v558_v15  ;;  %v676_v59 = vmul.f32 %v2176_v61, %v2086_v31  ;;  %v677_v14 = vmul.f32 %v2176_v61, %v2090_v34 }
 0x1b6   :  { %v599_v30 = vadd.f32 %v595_v29, %v589_v27  ;;  %v600_v13 = vadd.f32 %v596_v63, %v590_v32  ;;  %v682_v60 = vmul.f32 %v2185_v55, %v2093_v36  ;;  %v683_v43 = vmul.f32 %v2185_v55, %v2095_v37 }
 0x1b7   :  { %v577_v29 = vadd.f32 %v573_v10, %v567_v4  ;;  %v578_v63 = vadd.f32 %v574_v38, %v568_v16  ;;  %v692_v5 = vmul.f32 %v2196_v20, %v2104_v45  ;;  %v702_v31 = vmul.f32 %v2207_v47, %v2118_v57 }
 0x1b8   :  { %v609_v28 = vadd.f32 %v605_v40, %v599_v30  ;;  %v610_v7 = vadd.f32 %v606_v42, %v600_v13  ;;  %v693_v40 = vmul.f32 %v2196_v20, %v2110_v50  ;;  %v686_v61 = vadd.f32 %v682_v60, %v676_v59 }
 0x1b9   :  { %v587_v42 = vadd.f32 %v583_v46, %v577_v29  ;;  %v588_v34 = vadd.f32 %v584_v48, %v578_v63  ;;  %v687_v1 = vadd.f32 %v683_v43, %v677_v14  ;;  %v703_v36 = vmul.f32 %v2207_v47, %v2134_v8 }
 0x1ba   :  { %v614_v0 = vpack.c.bf16 %v610_v7, %v609_v28  ;;  %v712_v37 = vmul.f32 %v2223_v62, %v2143_v18  ;;  %v713_v45 = vmul.f32 %v2223_v62, %v2145_v19  ;;  %v696_v50 = vadd.f32 %v692_v5, %v686_v61 }
 0x1bb   :  { %v597_v55 = vadd.f32 %v593_v56, %v587_v42  ;;  %v598_v6 = vadd.f32 %v594_v17, %v588_v34  ;;  %v697_v20 = vadd.f32 %v693_v40, %v687_v1  ;;  %v722_v57 = vmul.f32 %v2230_v33, %v2157_v39 }
 0x1bc   :  { %1752 = vmatprep.subr.bf16.mxu0 %v614_v0  ;;  %v723_v53 = vmul.f32 %v2230_v33, %v2159_v44  ;;  %v706_v3 = vadd.f32 %v702_v31, %v696_v50  ;;  %v732_v18 = vmul.f32 %v2240_v35, %v2167_v51  ;;  %v733_v62 = vmul.f32 %v2240_v35, %v2187_v9 }
 0x1bd   :  { %v607_v54 = vadd.f32 %v603_v21, %v597_v55  ;;  %v608_v2 = vadd.f32 %v604_v22, %v598_v6  ;;  %v707_v8 = vadd.f32 %v703_v36, %v697_v20  ;;  %v742_v39 = vmul.f32 %v2249_v52, %v2198_v24 }
 0x1be   :  { %v716_v58 = vadd.f32 %v712_v37, %v706_v3  ;;  %v743_v44 = vmul.f32 %v2249_v52, %v2213_v49 }
 0x1bf   :  { %v613_v47 = vpack.c.bf16 %v608_v2, %v607_v54  ;;  %v717_v19 = vadd.f32 %v713_v45, %v707_v8 }
 0x1c0   :  { %v726_v11 = vadd.f32 %v722_v57, %v716_v58 }
 0x1c1   :  { %v727_v12 = vadd.f32 %v723_v53, %v717_v19 }
 0x1c2   :  { %v736_v33 = vadd.f32 %v732_v18, %v726_v11 }
 0x1c3   :  { %v737_v23 = vadd.f32 %v733_v62, %v727_v12 }
 0x1c4   :  { %v746_v25 = vadd.f32 %v742_v39, %v736_v33 }
 0x1c5   :  { %v747_v27 = vadd.f32 %v743_v44, %v737_v23 }
 0x1c7   :  { %v752_v32 = vpack.c.bf16 %v747_v27, %v746_v25 }
 0x1c9   :  { %1762 = vmatprep.subr.bf16.mxu1 %v752_v32 }
 0x1ca   :  { %1763 = vmatpush3.bf16.msra.mxu1 %v752_v32  ;;  %v1617_v32 = vld [vmem:[%s2683_s6 + $0x30] sm:$0xff] }
 0x254   :  { %v1742_v21 = vpop.f32.mrf.mxu0 }
 0x256   :  { %v342_v22 = vpop.f32.mrf.mxu0 }
 0x258   :  { %v1743_v28 = vpop.f32.mrf.mxu0 }
 0x259   :  { %v1726_v51 = vpop.f32.mrf.mxu1 }
 0x25a   :  { %v345_v7 = vpop.f32.mrf.mxu0 }
 0x25b   :  { %v242_v10 = vpop.f32.mrf.mxu1 }
 0x25d   :  { %v1727_v38 = vpop.f32.mrf.mxu1 }
 0x25e   :  { %v473_v35 = vpack.c.bf16 %v1727_v38, %v1726_v51  ;;  %v1618_v51 = vld [vmem:[%s2683_s6 + $0x38] sm:$0xff]  ;;  %v1615_v38 = vld [vmem:[%s2683_s6 + $0x20] sm:$0xff] }
 0x25f   :  { %v245_v26 = vpop.f32.mrf.mxu1 }
 0x260   :  { %v472_v9 = vpack.c.bf16 %v245_v26, %v242_v10  ;;  %v934_v10 = vpack.c.bf16 %v1618_v51, %v1617_v32  ;;  %v1616_v26 = vld [vmem:[%s2683_s6 + $0x28] sm:$0xff]  ;;  %s1623_s6 = sld [smem:[#allocation5 + $0x18]] }
 0x261   :  { %v1730_v15 = vpop.f32.mrf.mxu1 }
 0x262   :  { %1748 = vmatprep.mubr.msk.bf16.mxu0 %vm82_vm0, %v472_v9  ;;  %1784 = vmatprep.subr.bf16.mxu1 %v934_v10  ;;  %v933_v9 = vpack.c.bf16 %v1616_v26, %v1615_v38  ;;  %v2417_v38 = vld [vmem:[#allocation2 + $0x148] sm:$0xff] }
 0x263   :  { %v258_v24 = vpop.f32.mrf.mxu1  ;;  %1749 = vmatmul.mubr.msk.bf16.vlgmr.msra.gmra.mxu0 %vm82_vm0, %v473_v35 }
 0x264   :  { %1753 = vmatpush3.bf16.msra.mxu0 %v614_v0 }
 0x265   :  { %v1731_v49 = vpop.f32.mrf.mxu1  ;;  %1754 = vmatprep.subr.bf16.mxu0 %v613_v47 }
 0x266   :  { %v612_v48 = vpack.c.bf16 %v1731_v49, %v1730_v15 }
 0x267   :  { %v261_v52 = vpop.f32.mrf.mxu1 }
 0x268   :  { %v611_v46 = vpack.c.bf16 %v261_v52, %v258_v24  ;;  %1755 = vmatpush3.bf16.msra.mxu0 %v613_v47 }
 0x269   :  { %v1734_v30 = vpop.f32.mrf.mxu1 }
 0x26a   :  { %1756 = vmatprep.mubr.msk.bf16.mxu0 %vm82_vm0, %v611_v46 }
 0x26b   :  { %v274_v13 = vpop.f32.mrf.mxu1  ;;  %1757 = vmatmul.mubr.msk.bf16.vlgmr.msra.gmra.mxu0 %vm82_vm0, %v612_v48 }
 0x26c   :  { %1772 = vmatprep.mubr.msk.bf16.mxu0 %vm82_vm0, %v2004_v41  ;;  %v1577_v41 = vld [vmem:[%s2684_s7] ss:$0 sm:$0xff] }
 0x26d   :  { %v1735_v56 = vpop.f32.mrf.mxu1  ;;  %v351_v0 = vadd.f32 %v1742_v21, %v1577_v41  ;;  %v343_v5 = vadd.f32 %v1577_v41, %v342_v22  ;;  %v354_v42 = vadd.f32 %v1743_v28, %v1577_v41  ;;  %v346_v36 = vadd.f32 %v1577_v41, %v345_v7  ;;  %v2701_v41 = vld [vmem:[#allocation11_spill] sm:$0xff] }
 0x26e   :  { %v751_v16 = vpack.c.bf16 %v1735_v56, %v1734_v30 }
 0x26f   :  { %v277_v17 = vpop.f32.mrf.mxu1 }
 0x270   :  { %v750_v4 = vpack.c.bf16 %v277_v17, %v274_v13 }
 0x272   :  { %1764 = vmatprep.mubr.msk.bf16.mxu1 %vm82_vm0, %v750_v4 }
 0x273   :  { %1765 = vmatmul.mubr.msk.bf16.vlgmr.msra.gmra.mxu1 %vm82_vm0, %v751_v16 }
 0x274   :  { %1785 = vmatpush3.bf16.msra.mxu1 %v934_v10 }
 0x275   :  { %1786 = vmatprep.subr.bf16.mxu1 %v933_v9 }
 0x278   :  { %1787 = vmatpush3.bf16.msra.mxu1 %v933_v9 }
 0x323   :  { %v1750_v59 = vpop.f32.mrf.mxu0 }
 0x324   :  { %v533_v40 = vadd.f32 %v1750_v59, %v351_v0  ;;  %v2369_v0 = vld [vmem:[#allocation2 + $0x118] sm:$0xff] }
 0x325   :  { %v516_v14 = vpop.f32.mrf.mxu0 }
 0x326   :  { %v531_v34 = vadd.f32 %v516_v14, %v343_v5  ;;  %v2698_v14 = vld [vmem:[#allocation8_spill] sm:$0xff]  ;;  %v1004_v5 = vstv %s1623_s6 }
 0x327   :  { %v1751_v29 = vpop.f32.mrf.mxu0 }
 0x328   :  { %v534_v37 = vadd.f32 %v1751_v29, %v354_v42  ;;  %v2699_v29 = vld [vmem:[#allocation9_spill] sm:$0xff]  ;;  %v1008_v42 = vmul.f32 %v1004_v5, %v2369_v0 }
 0x329   :  { %v519_v63 = vpop.f32.mrf.mxu0 }
 0x32a   :  { %v532_v20 = vadd.f32 %v519_v63, %v346_v36  ;;  %v2700_v63 = vld [vmem:[#allocation10_spill] sm:$0xff] }
 0x32b   :  { %v1758_v60 = vpop.f32.mrf.mxu0 }
 0x32c   :  { %v672_v61 = vadd.f32 %v1758_v60, %v533_v40  ;;  %v2702_v60 = vld [vmem:[#allocation12_spill] sm:$0xff]  ;;  %v2371_v40 = vld [vmem:[#allocation2 + $0x130] sm:$0xff] }
 0x32d   :  { %v655_v43 = vpop.f32.mrf.mxu0 }
 0x32e   :  { %v670_v45 = vadd.f32 %v655_v43, %v531_v34  ;;  %v2367_v43 = vld [vmem:[#allocation2 + $0x110] sm:$0xff]  ;;  %v2375_v34 = vld [vmem:[#allocation2 + $0x138] sm:$0xff] }
 0x32f   :  { %v1759_v31 = vpop.f32.mrf.mxu0 }
 0x330   :  { %v673_v57 = vadd.f32 %v1759_v31, %v534_v37  ;;  %v1007_v31 = vmul.f32 %v1004_v5, %v2367_v43  ;;  %v2379_v37 = vld [vmem:[#allocation2 + $0x150] sm:$0xff] }
 0x331   :  { %v658_v6 = vpop.f32.mrf.mxu0 }
 0x332   :  { %v671_v3 = vadd.f32 %v658_v6, %v532_v20 }
 0x333   :  { %v1766_v1 = vpop.f32.mrf.mxu1 }
 0x334   :  { %v811_v55 = vadd.f32 %v1766_v1, %v672_v61  ;;  %v1015_v61 = vstv %s1624_s30 }
 0x335   :  { %v794_v50 = vpop.f32.mrf.mxu1  ;;  %v1018_v1 = vmul.f32 %v1015_v61, %v2371_v40  ;;  %v1019_v36 = vmul.f32 %v1015_v61, %v2375_v34 }
 0x336   :  { %v815_v53 = vmax.f32 %v811_v55, 0.0  ;;  %v809_v54 = vadd.f32 %v794_v50, %v670_v45  ;;  %v2381_v45 = vld [vmem:[#allocation2 + $0x158] sm:$0xff]  ;;  %v1030_v55 = vstv %s1625_s11 }
 0x337   :  { %v1767_v2 = vpop.f32.mrf.mxu1  ;;  %v1033_v6 = vmul.f32 %v1030_v55, %v2379_v37  ;;  %v1034_v50 = vmul.f32 %v1030_v55, %v2381_v45  ;;  %v1022_v20 = vadd.f32 %v1018_v1, %v1007_v31  ;;  %v2454_v31 = vld [vmem:[#allocation2 + $0x1f0] sm:$0xff] }
 0x338   :  { %v813_v8 = vmax.f32 %v809_v54, 0.0  ;;  %v812_v18 = vadd.f32 %v1767_v2, %v673_v57  ;;  %v819_v47 = vmul.f32 %v815_v53, %v815_v53  ;;  %v1023_v57 = vadd.f32 %v1019_v36, %v1008_v42  ;;  %v2389_v54 = vld [vmem:[#allocation2 + $0x178] sm:$0xff]  ;;  %v2461_v36 = vld [vmem:[#allocation2 + $0x1a0] sm:$0xff] }
 0x339   :  { %v797_v58 = vpop.f32.mrf.mxu1  ;;  %v1045_v2 = vstv %s1626_s12  ;;  %v2456_v42 = vld [vmem:[#allocation2 + $0x1f8] sm:$0xff] }
 0x33a   :  { %v816_v19 = vmax.f32 %v812_v18, 0.0  ;;  %v810_v62 = vadd.f32 %v797_v58, %v671_v3  ;;  %v827_v11 = vsel %vm82_vm0, %v819_v47, 0.0  ;;  %v817_v12 = vmul.f32 %v813_v8, %v813_v8  ;;  %v2393_v3 = vld [vmem:[#allocation2 + $0x100] sm:$0xff]  ;;  %v2397_v47 = vld [vmem:[#allocation2 + $0x108] sm:$0xff] }
 0x33b   :  { %828 = vadd.xlane.f32.xlu0 %v827_v11  ;;  %v1049_v18 = vmul.f32 %v1045_v2, %v2389_v54  ;;  %v1005_v58 = vmul.f32 %v1004_v5, %v2393_v3  ;;  %v1037_v11 = vadd.f32 %v1033_v6, %v1022_v20 }
 0x33c   :  { %v814_v39 = vmax.f32 %v810_v62, 0.0  ;;  %v820_v44 = vmul.f32 %v816_v19, %v816_v19  ;;  %v821_v33 = vsel %vm82_vm0, %v817_v12, 0.0  ;;  %v2402_v62 = vld [vmem:[#allocation2 + $0x128] sm:$0xff]  ;;  %v1038_v12 = vadd.f32 %v1034_v50, %v1023_v57 }
 0x33d   :  { %v1017_v10 = vmul.f32 %v1015_v61, %v2402_v62  ;;  %v2466_v57 = vld [vmem:[#allocation2 + $0x1a8] sm:$0xff] }
 0x33e   :  { %v830_v23 = vsel %vm82_vm0, %v820_v44, 0.0  ;;  %v818_v25 = vmul.f32 %v814_v39, %v814_v39  ;;  %v2406_v44 = vld [vmem:[#allocation2 + $0x198] sm:$0xff]  ;;  %v1053_v9 = vadd.f32 %v1049_v18, %v1038_v12  ;;  %v2474_v12 = vld [vmem:[#allocation2 + $0x1c0] sm:$0xff] }
 0x33f   :  { %822 = vadd.xlane.f32.xlu0 %v821_v33  ;;  %831 = vadd.xlane.f32.xlu1 %v830_v23  ;;  %v1060_v33 = vstv %s1627_s13  ;;  %v1006_v23 = vmul.f32 %v1004_v5, %v2397_v47 }
 0x340   :  { %v824_v27 = vsel %vm82_vm0, %v818_v25, 0.0  ;;  %v2411_v25 = vld [vmem:[#allocation2 + $0x140] sm:$0xff]  ;;  %v1064_v32 = vmul.f32 %v1060_v33, %v2406_v44 }
 0x343   :  { %825 = vadd.xlane.f32.xlu1 %v824_v27 }
 0x3c4   :  { %v829_v35 = vpop.xlane.xlu0 %828 }
 0x3c5   :  { %v835_v15 = vmax.f32 %v829_v35, 1e-24  ;;  %v2419_v35 = vld [vmem:[#allocation2 + $0x1b0] sm:$0xff] }
 0x3c7   :  { %1836 = vrsqrt.f32 %v835_v15  ;;  %v2421_v15 = vld [vmem:[#allocation2 + $0x1b8] sm:$0xff] }
 0x3c8   :  { %v823_v24 = vpop.xlane.xlu0 %822  ;;  %v832_v49 = vpop.xlane.xlu1 %831 }
 0x3c9   :  { %v833_v52 = vmax.f32 %v823_v24, 1e-24  ;;  %v836_v46 = vmax.f32 %v832_v49, 1e-24  ;;  %v1075_v24 = vstv %s2383_s14  ;;  %v1031_v49 = vmul.f32 %v1030_v55, %v2411_v25 }
 0x3cb   :  { %1838 = vrsqrt.f32 %v836_v46  ;;  %v1078_v46 = vmul.f32 %v1075_v24, %v2419_v35 }
 0x3cc   :  { %v826_v48 = vpop.xlane.xlu1 %825  ;;  %1840 = vrsqrt.f32 %v833_v52  ;;  %v2425_v52 = vld [vmem:[#allocation2 + $0x160] sm:$0xff] }
 0x3cd   :  { %v834_v30 = vmax.f32 %v826_v48, 1e-24  ;;  %v1079_v48 = vmul.f32 %v1075_v24, %v2421_v15 }
 0x3cf   :  { %1842 = vrsqrt.f32 %v834_v30 }
 0x3d4   :  { %v1837_v13 = vpop.eup %1836 }
 0x3d5   :  { %v843_v4 = vmul.f32 %v1837_v13, %v815_v53  ;;  %v2387_v53 = vld [vmem:[#allocation2 + $0x170] sm:$0xff]  ;;  %v1021_v13 = vadd.f32 %v1017_v10, %v1006_v23 }
 0x3d8   :  { %v1839_v56 = vpop.eup %1838 }
 0x3d9   :  { %v1841_v17 = vpop.eup %1840  ;;  %v844_v16 = vmul.f32 %v1839_v56, %v816_v19  ;;  %v2400_v19 = vld [vmem:[#allocation2 + $0x120] sm:$0xff] }
 0x3da   :  { %v841_v28 = vmul.f32 %v1841_v17, %v813_v8  ;;  %v1048_v8 = vmul.f32 %v1045_v2, %v2387_v53  ;;  %v1016_v51 = vmul.f32 %v1015_v61, %v2400_v19  ;;  %v1068_v17 = vadd.f32 %v1064_v32, %v1053_v9 }
 0x3db   :  { %v846_v22 = vpack.c.bf16 %v844_v16, %v843_v4  ;;  %v2431_v4 = vld [vmem:[#allocation2 + $0x1d0] sm:$0xff]  ;;  %v2433_v16 = vld [vmem:[#allocation2 + $0x1d8] sm:$0xff]  ;;  %v1105_v61 = vstv %s2408_s16 }
 0x3dc   :  { %v1843_v21 = vpop.eup %1842  ;;  %v1052_v26 = vadd.f32 %v1048_v8, %v1037_v11  ;;  %v1020_v30 = vadd.f32 %v1016_v51, %v1005_v58  ;;  %v1083_v5 = vadd.f32 %v1079_v48, %v1068_v17  ;;  %v1109_v6 = vmul.f32 %v1105_v61, %v2456_v42  ;;  %v2494_v48 = vld [vmem:[#allocation2 + $0x1c8] sm:$0xff] }
 0x3dd   :  { %v842_v7 = vmul.f32 %v1843_v21, %v814_v39  ;;  %1768 = vmatprep.subr.bf16.mxu0 %v846_v22  ;;  %v2404_v39 = vld [vmem:[#allocation2 + $0x190] sm:$0xff]  ;;  %v2436_v21 = vstv %s2391_s15  ;;  %v2503_v17 = vstv %s2459_s19 }
 0x3de   :  { %1769 = vmatpush3.bf16.msra.mxu0 %v846_v22  ;;  %v1063_v27 = vmul.f32 %v1060_v33, %v2404_v39  ;;  %v1091_v32 = vmul.f32 %v2436_v21, %v2474_v12 }
 0x3df   :  { %v845_v59 = vpack.c.bf16 %v842_v7, %v841_v28  ;;  %v2441_v28 = vld [vmem:[#allocation2 + $0x168] sm:$0xff]  ;;  %v1093_v7 = vmul.f32 %v2436_v21, %v2431_v4 }
 0x3e0   :  { %v1067_v56 = vadd.f32 %v1063_v27, %v1052_v26  ;;  %v1047_v50 = vmul.f32 %v1045_v2, %v2441_v28  ;;  %v1077_v27 = vmul.f32 %v1075_v24, %v2466_v57  ;;  %v2483_v26 = vstv %s2438_s17 }
 0x3e1   :  { %1770 = vmatprep.subr.bf16.mxu0 %v845_v59  ;;  %1788 = vmatprep.mubr.msk.bf16.mxu1 %vm82_vm0, %v845_v59  ;;  %v1320_v9 = vmul.f32 %v2483_v26, %v2367_v43 }
 0x3e2   :  { %1789 = vmatmul.mubr.msk.bf16.vlgmr.msra.gmra.mxu1 %vm82_vm0, %v846_v22  ;;  %1771 = vmatpush3.bf16.msra.mxu0 %v845_v59  ;;  %v1032_v22 = vmul.f32 %v1030_v55, %v2417_v38  ;;  %v1094_v59 = vmul.f32 %v2436_v21, %v2433_v16  ;;  %v1108_v55 = vmul.f32 %v1105_v61, %v2454_v31 }
 0x3e4   :  { %v1036_v1 = vadd.f32 %v1032_v22, %v1021_v13  ;;  %v1098_v18 = vadd.f32 %v1094_v59, %v1083_v5  ;;  %v2505_v22 = vld [vmem:[#allocation2 + $0x1e0] sm:$0xff]  ;;  %v1337_v59 = vmul.f32 %v2503_v17, %v2381_v45 }
 0x3e5   :  { %1773 = vmatmul.mubr.msk.bf16.vlgmr.msra.gmra.mxu0 %vm82_vm0, %v2698_v14  ;;  %v1035_v14 = vadd.f32 %v1031_v49, %v1020_v30  ;;  %v1321_v49 = vmul.f32 %v2483_v26, %v2369_v0 }
 0x3e6   :  { %1776 = vmatprep.mubr.msk.bf16.mxu0 %vm82_vm0, %v2699_v29  ;;  %v1046_v29 = vmul.f32 %v1045_v2, %v2425_v52  ;;  %v1051_v23 = vadd.f32 %v1047_v50, %v1036_v1  ;;  %v1076_v2 = vmul.f32 %v1075_v24, %v2461_v36  ;;  %v1113_v10 = vadd.f32 %v1109_v6, %v1098_v18  ;;  %v2520_v6 = vld [vmem:[#allocation2 + $0x1e8] sm:$0xff] }
 0x3e7   :  { %v2492_v24 = vstv %s2447_s18  ;;  %v2514_v1 = vstv %s2470_s3  ;;  %v1106_v18 = vmul.f32 %v1105_v61, %v2505_v22 }
 0x3e8   :  { %v1050_v20 = vadd.f32 %v1046_v29, %v1035_v14  ;;  %v1326_v13 = vmul.f32 %v2492_v24, %v2371_v40  ;;  %v1346_v50 = vmul.f32 %v2514_v1, %v2387_v53 }
 0x3ed   :  { %1777 = vmatmul.mubr.msk.bf16.gmra.mxu0 %vm82_vm0, %v2700_v63  ;;  %v2450_v63 = vld [vmem:[#allocation2 + $0x180] sm:$0xff] }
 0x3ee   :  { %1780 = vmatprep.mubr.msk.bf16.mxu0 %vm82_vm0, %v2701_v41  ;;  %v2452_v41 = vld [vmem:[#allocation2 + $0x188] sm:$0xff]  ;;  %v1061_v58 = vmul.f32 %v1060_v33, %v2450_v63 }
 0x3ef   :  { %v1062_v11 = vmul.f32 %v1060_v33, %v2452_v41 }
 0x3f0   :  { %v1065_v33 = vadd.f32 %v1061_v58, %v1050_v20  ;;  %v1347_v20 = vmul.f32 %v2514_v1, %v2389_v54 }
 0x3f2   :  { %v1080_v14 = vadd.f32 %v1076_v2, %v1065_v33 }
 0x3f5   :  { %1781 = vmatmul.mubr.msk.bf16.gmra.mxu0 %vm82_vm0, %v2702_v60  ;;  %v1082_v60 = vadd.f32 %v1078_v46, %v1067_v56  ;;  %v1066_v46 = vadd.f32 %v1062_v11, %v1051_v23  ;;  %v1327_v56 = vmul.f32 %v2492_v24, %v2375_v34  ;;  %v2530_v23 = vstv %s2485_s21 }
 0x3f6   :  { %v1356_v2 = vmul.f32 %v2530_v23, %v2404_v39 }
 0x3f7   :  { %v1097_v8 = vadd.f32 %v1093_v7, %v1082_v60  ;;  %v1336_v7 = vmul.f32 %v2503_v17, %v2379_v37  ;;  %v1081_v29 = vadd.f32 %v1077_v27, %v1066_v46  ;;  %v1330_v60 = vadd.f32 %v1326_v13, %v1320_v9 }
 0x3f8   :  { %v1331_v5 = vadd.f32 %v1327_v56, %v1321_v49  ;;  %v1357_v27 = vmul.f32 %v2530_v23, %v2406_v44  ;;  %v2537_v9 = vstv %s1648_s23  ;;  %v1178_v49 = vstv %s2429_s2 }
 0x3f9   :  { %v1112_v51 = vadd.f32 %v1108_v55, %v1097_v8  ;;  %v1092_v55 = vmul.f32 %v2436_v21, %v2494_v48  ;;  %v1095_v8 = vadd.f32 %v1091_v32, %v1080_v14  ;;  %v1340_v58 = vadd.f32 %v1336_v7, %v1330_v60 }
 0x3fa   :  { %v1341_v11 = vadd.f32 %v1337_v59, %v1331_v5  ;;  %v1366_v46 = vmul.f32 %v2537_v9, %v2419_v35  ;;  %v2547_v13 = vstv %s2511_s5  ;;  %v1181_v5 = vmul.f32 %v1178_v49, %v2367_v43 }
 0x3fb   :  { %v1117_v30 = vpack.c.bf16 %v1113_v10, %v1112_v51  ;;  %v1096_v21 = vadd.f32 %v1092_v55, %v1081_v29  ;;  %v1107_v51 = vmul.f32 %v1105_v61, %v2520_v6  ;;  %v1110_v32 = vadd.f32 %v1106_v18, %v1095_v8 }
 0x3fc   :  { %v1350_v10 = vadd.f32 %v1346_v50, %v1340_v58  ;;  %v1351_v33 = vadd.f32 %v1347_v20, %v1341_v11  ;;  %v1376_v59 = vmul.f32 %v2547_v13, %v2431_v4  ;;  %v1377_v14 = vmul.f32 %v2547_v13, %v2433_v16 }
 0x3fd   :  { %1792 = vmatprep.subr.bf16.mxu1 %v1117_v30  ;;  %v1111_v56 = vadd.f32 %v1107_v51, %v1096_v21  ;;  %v2556_v29 = vstv %s2516_s24  ;;  %v1182_v55 = vmul.f32 %v1178_v49, %v2369_v0  ;;  %v1184_v58 = vstv %s2468_s0 }
 0x3fe   :  { %1793 = vmatpush3.bf16.msra.mxu1 %v1117_v30  ;;  %v1367_v30 = vmul.f32 %v2537_v9, %v2421_v15  ;;  %v1360_v61 = vadd.f32 %v1356_v2, %v1350_v10  ;;  %v1361_v7 = vadd.f32 %v1357_v27, %v1351_v33  ;;  %v1386_v8 = vmul.f32 %v2556_v29, %v2454_v31 }
 0x3ff   :  { %v1116_v60 = vpack.c.bf16 %v1111_v56, %v1110_v32  ;;  %v1387_v18 = vmul.f32 %v2556_v29, %v2456_v42  ;;  %v1194_v11 = vstv %s2480_s20  ;;  %v1204_v21 = vstv %s2496_s22 }
 0x400   :  { %v1370_v50 = vadd.f32 %v1366_v46, %v1360_v61  ;;  %v1371_v20 = vadd.f32 %v1367_v30, %v1361_v7  ;;  %v1214_v2 = vstv %s2527_s25  ;;  %v1187_v0 = vmul.f32 %v1184_v58, %v2371_v40 }
 0x401   :  { %1794 = vmatprep.subr.bf16.mxu1 %v1116_v60  ;;  %v1188_v51 = vmul.f32 %v1184_v58, %v2375_v34  ;;  %v1197_v32 = vmul.f32 %v1194_v11, %v2379_v37  ;;  %v1198_v10 = vmul.f32 %v1194_v11, %v2381_v45  ;;  %v1207_v33 = vmul.f32 %v1204_v21, %v2387_v53 }
 0x402   :  { %v1380_v27 = vadd.f32 %v1376_v59, %v1370_v50  ;;  %v1381_v43 = vadd.f32 %v1377_v14, %v1371_v20  ;;  %1795 = vmatpush3.bf16.msra.mxu1 %v1116_v60  ;;  %v1208_v46 = vmul.f32 %v1204_v21, %v2389_v54  ;;  %v1191_v61 = vadd.f32 %v1187_v0, %v1181_v5 }
 0x403   :  { %v1192_v7 = vadd.f32 %v1188_v51, %v1182_v55  ;;  %v1217_v59 = vmul.f32 %v1214_v2, %v2404_v39  ;;  %v1218_v14 = vmul.f32 %v1214_v2, %v2406_v44  ;;  %v1224_v40 = vstv %s2540_s4 }
 0x404   :  { %v1390_v30 = vadd.f32 %v1386_v8, %v1380_v27  ;;  %v1391_v56 = vadd.f32 %v1387_v18, %v1381_v43  ;;  %v1234_v60 = vstv %s2549_s26  ;;  %v1201_v50 = vadd.f32 %v1197_v32, %v1191_v61 }
 0x405   :  { %v1202_v37 = vadd.f32 %v1198_v10, %v1192_v7  ;;  %v1227_v45 = vmul.f32 %v1224_v40, %v2419_v35  ;;  %v1228_v53 = vmul.f32 %v1224_v40, %v2421_v15  ;;  %v1237_v54 = vmul.f32 %v1234_v60, %v2431_v4 }
 0x406   :  { %v1395_v34 = vpack.c.bf16 %v1391_v56, %v1390_v30  ;;  %v1238_v20 = vmul.f32 %v1234_v60, %v2433_v16  ;;  %v1244_v8 = vstv %s2560_s27  ;;  %v1211_v5 = vadd.f32 %v1207_v33, %v1201_v50 }
 0x407   :  { %v1212_v55 = vadd.f32 %v1208_v46, %v1202_v37  ;;  %v1247_v39 = vmul.f32 %v1244_v8, %v2454_v31  ;;  %v1248_v44 = vmul.f32 %v1244_v8, %v2456_v42  ;;  %v1179_v18 = vmul.f32 %v1178_v49, %v2393_v3 }
 0x408   :  { %1808 = vmatprep.subr.bf16.mxu0 %v1395_v34  ;;  %v1180_v27 = vmul.f32 %v1178_v49, %v2397_v47  ;;  %v1185_v35 = vmul.f32 %v1184_v58, %v2400_v19  ;;  %v1186_v15 = vmul.f32 %v1184_v58, %v2402_v62  ;;  %v1221_v4 = vadd.f32 %v1217_v59, %v1211_v5 }
 0x409   :  { %1809 = vmatpush3.bf16.msra.mxu0 %v1395_v34  ;;  %v1222_v43 = vadd.f32 %v1218_v14, %v1212_v55  ;;  %v1195_v16 = vmul.f32 %v1194_v11, %v2411_v25  ;;  %v1196_v0 = vmul.f32 %v1194_v11, %v2417_v38  ;;  %v1205_v31 = vmul.f32 %v1204_v21, %v2425_v52 }
 0x40a   :  { %v1189_v51 = vadd.f32 %v1185_v35, %v1179_v18  ;;  %v1190_v32 = vadd.f32 %v1186_v15, %v1180_v27  ;;  %v1206_v42 = vmul.f32 %v1204_v21, %v2441_v28  ;;  %v1231_v10 = vadd.f32 %v1227_v45, %v1221_v4 }
 0x40b   :  { %v1232_v33 = vadd.f32 %v1228_v53, %v1222_v43  ;;  %v1215_v49 = vmul.f32 %v1214_v2, %v2450_v63  ;;  %v1216_v46 = vmul.f32 %v1214_v2, %v2452_v41  ;;  %v1225_v56 = vmul.f32 %v1224_v40, %v2461_v36 }
 0x40c   :  { %v1199_v30 = vadd.f32 %v1195_v16, %v1189_v51  ;;  %v1200_v58 = vadd.f32 %v1196_v0, %v1190_v32  ;;  %v1226_v61 = vmul.f32 %v1224_v40, %v2466_v57  ;;  %v1241_v7 = vadd.f32 %v1237_v54, %v1231_v10 }
 0x40d   :  { %v1242_v11 = vadd.f32 %v1238_v20, %v1232_v33  ;;  %v1235_v59 = vmul.f32 %v1234_v60, %v2474_v12  ;;  %v1236_v14 = vmul.f32 %v1234_v60, %v2494_v48  ;;  %v1245_v50 = vmul.f32 %v1244_v8, %v2505_v22 }
 0x40e   :  { %v1209_v34 = vadd.f32 %v1205_v31, %v1199_v30  ;;  %v1210_v21 = vadd.f32 %v1206_v42, %v1200_v58  ;;  %v1246_v37 = vmul.f32 %v1244_v8, %v2520_v6  ;;  %v1251_v45 = vadd.f32 %v1247_v39, %v1241_v7 }
 0x40f   :  { %v1252_v2 = vadd.f32 %v1248_v44, %v1242_v11  ;;  %v1318_v53 = vmul.f32 %v2483_v26, %v2393_v3  ;;  %v1319_v40 = vmul.f32 %v2483_v26, %v2397_v47  ;;  %v1324_v5 = vmul.f32 %v2492_v24, %v2400_v19 }
 0x410   :  { %v1219_v54 = vadd.f32 %v1215_v49, %v1209_v34  ;;  %v1220_v20 = vadd.f32 %v1216_v46, %v1210_v21  ;;  %v1325_v60 = vmul.f32 %v2492_v24, %v2402_v62  ;;  %v1334_v8 = vmul.f32 %v2503_v17, %v2411_v25 }
 0x411   :  { %v1256_v55 = vpack.c.bf16 %v1252_v2, %v1251_v45  ;;  %v1335_v39 = vmul.f32 %v2503_v17, %v2417_v38  ;;  %v1344_v3 = vmul.f32 %v2514_v1, %v2425_v52  ;;  %v1328_v26 = vadd.f32 %v1324_v5, %v1318_v53 }
 0x412   :  { %v1229_v44 = vadd.f32 %v1225_v56, %v1219_v54  ;;  %v1230_v47 = vadd.f32 %v1226_v61, %v1220_v20  ;;  %v1329_v18 = vadd.f32 %v1325_v60, %v1319_v40  ;;  %v1345_v19 = vmul.f32 %v2514_v1, %v2441_v28  ;;  %v1620_v20 = vld [vmem:[%s2684_s7 + $0x1] ss:$0 sm:$0xff] }
 0x413   :  { %1800 = vmatprep.subr.bf16.mxu1 %v1256_v55  ;;  %v1354_v62 = vmul.f32 %v2530_v23, %v2450_v63  ;;  %v1355_v25 = vmul.f32 %v2530_v23, %v2452_v41  ;;  %v1338_v38 = vadd.f32 %v1334_v8, %v1328_v26  ;;  %v1364_v52 = vmul.f32 %v2537_v9, %v2461_v36 }
 0x414   :  { %v1239_v24 = vadd.f32 %v1235_v59, %v1229_v44  ;;  %v1240_v27 = vadd.f32 %v1236_v14, %v1230_v47  ;;  %v1339_v17 = vadd.f32 %v1335_v39, %v1329_v18  ;;  %v1365_v35 = vmul.f32 %v2537_v9, %v2466_v57 }
 0x415   :  { %v1348_v43 = vadd.f32 %v1344_v3, %v1338_v38  ;;  %v1374_v63 = vmul.f32 %v2547_v13, %v2474_v12  ;;  %v1375_v23 = vmul.f32 %v2547_v13, %v2494_v48  ;;  %v1384_v36 = vmul.f32 %v2556_v29, %v2505_v22 }
 0x416   :  { %v1249_v15 = vadd.f32 %v1245_v50, %v1239_v24  ;;  %v1250_v4 = vadd.f32 %v1246_v37, %v1240_v27  ;;  %v1349_v28 = vadd.f32 %v1345_v19, %v1339_v17  ;;  %v1385_v57 = vmul.f32 %v2556_v29, %v2520_v6 }
 0x417   :  { %v1358_v16 = vadd.f32 %v1354_v62, %v1348_v43 }
 0x418   :  { %v1255_v1 = vpack.c.bf16 %v1250_v4, %v1249_v15  ;;  %v1359_v41 = vadd.f32 %v1355_v25, %v1349_v28 }
 0x419   :  { %v1368_v0 = vadd.f32 %v1364_v52, %v1358_v16 }
 0x41a   :  { %v1369_v51 = vadd.f32 %v1365_v35, %v1359_v41 }
 0x41b   :  { %v1378_v9 = vadd.f32 %v1374_v63, %v1368_v0 }
 0x41c   :  { %v1379_v32 = vadd.f32 %v1375_v23, %v1369_v51 }
 0x41d   :  { %v1388_v31 = vadd.f32 %v1384_v36, %v1378_v9 }
 0x41e   :  { %v1389_v42 = vadd.f32 %v1385_v57, %v1379_v32 }
 0x420   :  { %v1394_v10 = vpack.c.bf16 %v1389_v42, %v1388_v31 }
 0x422   :  { %1810 = vmatprep.subr.bf16.mxu0 %v1394_v10 }
 0x423   :  { %1811 = vmatpush3.bf16.msra.mxu0 %v1394_v10  ;;  %v1489_v10 = vld [vmem:[%s2685_s8 + $0x10] sm:$0xff] }
 0x4a2   :  { %v1790_v21 = vpop.f32.mrf.mxu1 }
 0x4a4   :  { %v983_v50 = vpop.f32.mrf.mxu1 }
 0x4a5   :  { %v1774_v12 = vpop.f32.mrf.mxu0  ;;  %v984_v8 = vadd.f32 %v1620_v20, %v983_v50 }
 0x4a6   :  { %v1791_v37 = vpop.f32.mrf.mxu1 }
 0x4a7   :  { %v881_v33 = vpop.f32.mrf.mxu0  ;;  %v995_v44 = vadd.f32 %v1791_v37, %v1620_v20 }
 0x4a8   :  { %v986_v45 = vpop.f32.mrf.mxu1 }
 0x4a9   :  { %v1775_v49 = vpop.f32.mrf.mxu0  ;;  %v987_v19 = vadd.f32 %v1620_v20, %v986_v45 }
 0x4aa   :  { %v1115_v13 = vpack.c.bf16 %v1775_v49, %v1774_v12  ;;  %v1490_v12 = vld [vmem:[%s2685_s8 + $0x18] sm:$0xff] }
 0x4ab   :  { %v884_v46 = vpop.f32.mrf.mxu0  ;;  %v1494_v49 = vpack.c.bf16 %v1490_v12, %v1489_v10 }
 0x4ac   :  { %v1114_v48 = vpack.c.bf16 %v884_v46, %v881_v33  ;;  %v1487_v33 = vld [vmem:[%s2685_s8] sm:$0xff]  ;;  %v1488_v46 = vld [vmem:[%s2685_s8 + $0x8] sm:$0xff] }
 0x4ad   :  { %v1778_v30 = vpop.f32.mrf.mxu0 }
 0x4ae   :  { %1796 = vmatprep.mubr.msk.bf16.mxu1 %vm82_vm0, %v1114_v48  ;;  %v1493_v48 = vpack.c.bf16 %v1488_v46, %v1487_v33 }
 0x4af   :  { %v897_v22 = vpop.f32.mrf.mxu0  ;;  %1797 = vmatmul.mubr.msk.bf16.vlgmr.msra.gmra.mxu1 %vm82_vm0, %v1115_v13 }
 0x4b0   :  { %1801 = vmatpush3.bf16.msra.mxu1 %v1256_v55  ;;  %v992_v55 = vadd.f32 %v1790_v21, %v1620_v20 }
 0x4b1   :  { %v1779_v6 = vpop.f32.mrf.mxu0  ;;  %1802 = vmatprep.subr.bf16.mxu1 %v1255_v1 }
 0x4b2   :  { %v1254_v56 = vpack.c.bf16 %v1779_v6, %v1778_v30 }
 0x4b3   :  { %v900_v29 = vpop.f32.mrf.mxu0 }
 0x4b4   :  { %v1253_v58 = vpack.c.bf16 %v900_v29, %v897_v22  ;;  %1803 = vmatpush3.bf16.msra.mxu1 %v1255_v1 }
 0x4b5   :  { %v1782_v61 = vpop.f32.mrf.mxu0  ;;  %1816 = vmatprep.subr.bf16.mxu1 %v1494_v49 }
 0x4b6   :  { %1804 = vmatprep.mubr.msk.bf16.mxu1 %vm82_vm0, %v1253_v58 }
 0x4b7   :  { %v913_v7 = vpop.f32.mrf.mxu0  ;;  %1805 = vmatmul.mubr.msk.bf16.vlgmr.msra.gmra.mxu1 %vm82_vm0, %v1254_v56 }
 0x4b8   :  { %1817 = vmatpush3.bf16.msra.mxu1 %v1494_v49 }
 0x4b9   :  { %v1783_v11 = vpop.f32.mrf.mxu0  ;;  %1818 = vmatprep.subr.bf16.mxu1 %v1493_v48 }
 0x4ba   :  { %v1393_v34 = vpack.c.bf16 %v1783_v11, %v1782_v61 }
 0x4bb   :  { %v916_v59 = vpop.f32.mrf.mxu0 }
 0x4bc   :  { %v1392_v14 = vpack.c.bf16 %v916_v59, %v913_v7  ;;  %1819 = vmatpush3.bf16.msra.mxu1 %v1493_v48 }
 0x4be   :  { %1812 = vmatprep.mubr.msk.bf16.mxu0 %vm82_vm0, %v1392_v14 }
 0x4bf   :  { %1813 = vmatmul.mubr.msk.bf16.vlgmr.msra.gmra.mxu0 %vm82_vm0, %v1393_v34 }
 0x56f   :  { %v1798_v2 = vpop.f32.mrf.mxu1 }
 0x570   :  { %v1175_v39 = vadd.f32 %v1798_v2, %v992_v55 }
 0x571   :  { %v1158_v53 = vpop.f32.mrf.mxu1 }
 0x572   :  { %v1173_v47 = vadd.f32 %v1158_v53, %v984_v8  ;;  %v1653_v53 = vld [vmem:[%s2686_s9] ss:$0 sm:$0xff] }
 0x573   :  { %v1799_v40 = vpop.f32.mrf.mxu1 }
 0x574   :  { %v1176_v62 = vadd.f32 %v1799_v40, %v995_v44 }
 0x575   :  { %v1161_v54 = vpop.f32.mrf.mxu1 }
 0x576   :  { %v1174_v17 = vadd.f32 %v1161_v54, %v987_v19 }
 0x577   :  { %v1806_v5 = vpop.f32.mrf.mxu1 }
 0x578   :  { %v1314_v26 = vadd.f32 %v1806_v5, %v1175_v39 }
 0x579   :  { %v1297_v60 = vpop.f32.mrf.mxu1 }
 0x57a   :  { %v1312_v25 = vadd.f32 %v1297_v60, %v1173_v47 }
 0x57b   :  { %v1807_v3 = vpop.f32.mrf.mxu1 }
 0x57c   :  { %v1315_v52 = vadd.f32 %v1807_v3, %v1176_v62 }
 0x57d   :  { %v1300_v27 = vpop.f32.mrf.mxu1 }
 0x57e   :  { %v1313_v4 = vadd.f32 %v1300_v27, %v1174_v17 }
 0x57f   :  { %v1814_v18 = vpop.f32.mrf.mxu0 }
 0x580   :  { %v1453_v24 = vadd.f32 %v1814_v18, %v1314_v26 }
 0x581   :  { %v1436_v38 = vpop.f32.mrf.mxu0 }
 0x582   :  { %v1451_v35 = vadd.f32 %v1436_v38, %v1312_v25  ;;  %v1457_v43 = vmax.f32 %v1453_v24, 0.0 }
 0x583   :  { %v1815_v15 = vpop.f32.mrf.mxu0 }
 0x584   :  { %v1455_v28 = vmax.f32 %v1451_v35, 0.0  ;;  %v1454_v63 = vadd.f32 %v1815_v15, %v1315_v52  ;;  %v1461_v36 = vmul.f32 %v1457_v43, %v1457_v43 }
 0x585   :  { %v1439_v1 = vpop.f32.mrf.mxu0 }
 0x586   :  { %v1452_v16 = vadd.f32 %v1439_v1, %v1313_v4  ;;  %v1459_v41 = vmul.f32 %v1455_v28, %v1455_v28  ;;  %v1458_v23 = vmax.f32 %v1454_v63, 0.0  ;;  %v1469_v9 = vsel %vm82_vm0, %v1461_v36, 0.0 }
 0x588   :  { %v1456_v0 = vmax.f32 %v1452_v16, 0.0  ;;  %v1463_v51 = vsel %vm82_vm0, %v1459_v41, 0.0  ;;  %v1462_v31 = vmul.f32 %v1458_v23, %v1458_v23 }
 0x589   :  { %1464 = vadd.xlane.f32.xlu0 %v1463_v51 }
 0x58a   :  { %v1460_v57 = vmul.f32 %v1456_v0, %v1456_v0  ;;  %v1472_v42 = vsel %vm82_vm0, %v1462_v31, 0.0 }
 0x58c   :  { %v1466_v32 = vsel %vm82_vm0, %v1460_v57, 0.0 }
 0x58d   :  { %1470 = vadd.xlane.f32.xlu0 %v1469_v9  ;;  %1467 = vadd.xlane.f32.xlu1 %v1466_v32 }
 0x591   :  { %1473 = vadd.xlane.f32.xlu1 %v1472_v42 }
 0x612   :  { %v1465_v13 = vpop.xlane.xlu0 %1464 }
 0x613   :  { %v1475_v30 = vmax.f32 %v1465_v13, 1e-24 }
 0x615   :  { %1844 = vrsqrt.f32 %v1475_v30 }
 0x616   :  { %v1471_v22 = vpop.xlane.xlu0 %1470  ;;  %v1468_v6 = vpop.xlane.xlu1 %1467 }
 0x617   :  { %v1477_v29 = vmax.f32 %v1471_v22, 1e-24  ;;  %v1476_v58 = vmax.f32 %v1468_v6, 1e-24 }
 0x619   :  { %1846 = vrsqrt.f32 %v1476_v58 }
 0x61a   :  { %v1474_v56 = vpop.xlane.xlu1 %1473  ;;  %1848 = vrsqrt.f32 %v1477_v29 }
 0x61b   :  { %v1478_v61 = vmax.f32 %v1474_v56, 1e-24 }
 0x61d   :  { %1850 = vrsqrt.f32 %v1478_v61 }
 0x622   :  { %v1845_v7 = vpop.eup %1844 }
 0x623   :  { %v1483_v14 = vmul.f32 %v1845_v7, %v1455_v28 }
 0x626   :  { %v1847_v11 = vpop.eup %1846 }
 0x627   :  { %v1849_v59 = vpop.eup %1848  ;;  %v1484_v34 = vmul.f32 %v1847_v11, %v1456_v0 }
 0x628   :  { %v1485_v37 = vmul.f32 %v1849_v59, %v1457_v43 }
 0x629   :  { %v1491_v50 = vpack.c.bf16 %v1484_v34, %v1483_v14 }
 0x62a   :  { %v1851_v21 = vpop.eup %1850 }
 0x62b   :  { %v1486_v45 = vmul.f32 %v1851_v21, %v1458_v23  ;;  %1820 = vmatprep.mubr.msk.bf16.mxu1 %vm82_vm0, %v1491_v50 }
 0x62d   :  { %v1492_v2 = vpack.c.bf16 %v1486_v45, %v1485_v37 }
 0x62f   :  { %1821 = vmatmul.mubr.msk.bf16.vlgmr.msra.gmra.mxu1 %vm82_vm0, %v1492_v2 }
 0x6ef   :  { %v1822_v40 = vpop.f32.mrf.mxu1 }
 0x6f0   :  { %v1551_v54 = vadd.f32 %v1822_v40, %v1653_v53 }
 0x6f1   :  { %v1542_v20 = vpop.f32.mrf.mxu1 }
 0x6f2   :  { %1560 = vst.msk [vmem:[%s2687_s10 + $0x10] sm:$0xff] %vm1557_vm1, %v1551_v54  ;;  %v1543_v5 = vadd.f32 %v1653_v53, %v1542_v20 }
 0x6f3   :  { %v1823_v60 = vpop.f32.mrf.mxu1 }
 0x6f4   :  { %1558 = vst.msk [vmem:[%s2687_s10] sm:$0xff] %vm1557_vm1, %v1543_v5  ;;  %v1554_v55 = vadd.f32 %v1823_v60, %v1653_v53 }
 0x6f5   :  { %v1545_v8 = vpop.f32.mrf.mxu1 }
 0x6f6   :  { %1561 = vst.msk [vmem:[%s2687_s10 + $0x18] sm:$0xff] %vm1557_vm1, %v1554_v55  ;;  %v1546_v39 = vadd.f32 %v1653_v53, %v1545_v8 }
 0x6f8   :  { %1559 = vst.msk [vmem:[%s2687_s10 + $0x8] sm:$0xff] %vm1557_vm1, %v1546_v39 }
 0x6f9   :  { %1566 = vsyncpa [#allocation3], 1 }
 0x6fa   :  { %1567 = vsyncpa [#allocation4], 1 }

</bundles_post_ra>
